<compile_context>
chip_gen: v7x
topology: tpu7x:2x2x1
jax: 0.10.0
libtpu: 0.0.40
codegen_flags: <defaults>
</compile_context>

<pallas_src>
import jax
import jax.numpy as jnp
from jax import lax
from jax.experimental import pallas as pl
from jax.experimental.pallas import tpu as pltpu


# ----------------------------------------------------------------------------
# Pallas kernel: fused (1x1 conv + folded BN + ReLU) chain + neighbourhood max
# ----------------------------------------------------------------------------
def _sa_kernel(num_layers, tm, nsample):
    """Kernel args: (x, w0, b0, w1, b1, ..., out).

    x   : [tm*nsample, 3+C]  bf16   merged (pos || feat), channels-last
    w_i : [Cin_i, Cout_i]    bf16   folded BN, Cout padded to multiple of 128
    b_i : [1, Cout_i]        f32
    out : [tm, Cout_last]    f32    lane-dense (Cout_last % 128 == 0)
    """

    def kernel(x_ref, *rest):
        out_ref = rest[-1]
        h = x_ref[...]                                   # bf16 [tk, 3+C]
        idx = 0
        for li in range(num_layers):
            w, b = rest[idx], rest[idx + 1]
            idx += 2
            # bf16 MXU matmul with f32 accumulation; bias/ReLU in f32.
            acc = jnp.dot(h, w[...], preferred_element_type=jnp.float32)
            acc = jnp.maximum(acc + b[...], 0.0)
            h = acc.astype(jnp.bfloat16) if li + 1 < num_layers else acc

        # torch.max(new_points, 2)[0]: max over the nsample neighbours.
        h = h.reshape(tm, nsample, h.shape[-1])
        out_ref[...] = jnp.max(h, axis=1)

    return kernel


# ----------------------------------------------------------------------------
# Host-side glue: grouping, BN folding, layer packing, pallas_call wrapper
# ----------------------------------------------------------------------------
def _round128(c):
    return ((c + 127) // 128) * 128


def _pad2(w, rows, cols):
    return jnp.pad(w, ((0, rows - w.shape[0]), (0, cols - w.shape[1])))


def group_and_flatten(xyz, points, offset, nsample):
    """sample_and_group (stride=1, return_polar=False), merged channels-last.

    Returns [N*nsample, 3+C] bf16 rows = [group_xyz_norm || group_points].
    NOTE: assumes every batch has >= nsample points (as pointops.knnquery
    effectively requires); cross-batch neighbours are masked with +inf.
    """
    n = xyz.shape[0]
    c = points.shape[1]
    batch_id = jnp.searchsorted(offset, jnp.arange(n), side="right")
    d2 = jnp.sum((xyz[:, None, :] - xyz[None, :, :]) ** 2, axis=-1)
    d2 = jnp.where(batch_id[:, None] == batch_id[None, :], d2, jnp.inf)
    _, group_idx = lax.top_k(-d2, nsample)               # [N, nsample]
    group_xyz = xyz[group_idx]                           # [N, nsample, 3]
    group_xyz_norm = group_xyz - xyz[:, None, :]
    group_points = points[group_idx]                     # [N, nsample, C]
    merged = jnp.concatenate([group_xyz_norm, group_points], axis=-1)
    return merged.reshape(n * nsample, 3 + c).astype(jnp.bfloat16)


def fold_bn(w, conv_b, gamma, beta, mean, var, eps=1e-5):
    """Fold inference-mode BatchNorm1d into a channels-last matmul (W, b)."""
    s = gamma / jnp.sqrt(var + eps)
    w_f = w * s[None, :]
    b = conv_b if conv_b is not None else jnp.zeros_like(gamma)
    b_f = (b - mean) * s + beta
    return w_f, b_f


def init_params(key, in_channel, mlp, pos_channel=3):
    """Deterministic synthetic weights. Conv1d [out,in,1] stored as [in,out].

    Returns a list of folded (W, b) layers with layer 0 already merged:
      layer0 W = [wl0 ; wf0]  (pos rows on top, feat rows below), b = bl0+bf0.
    """
    keys = iter(jax.random.split(key, 64))

    def bn_params(c):
        gamma = 1.0 + 0.1 * jax.random.normal(next(keys), (c,))
        beta = 0.1 * jax.random.normal(next(keys), (c,))
        mean = 0.05 * jax.random.normal(next(keys), (c,))
        var = 1.0 + 0.1 * jax.random.uniform(next(keys), (c,))
        return gamma, beta, mean, var

    h0 = mlp[0]
    wl0 = 0.2 * jax.random.normal(next(keys), (pos_channel, h0))   # mlp_l0
    wl0, bl0 = fold_bn(wl0, None, *bn_params(h0))                  # + norm_l0
    wf0 = 0.2 * jax.random.normal(next(keys), (in_channel, h0))    # mlp_f0
    wf0, bf0 = fold_bn(wf0, None, *bn_params(h0))                  # + norm_f0
    layers = [(jnp.concatenate([wl0, wf0], axis=0), bl0 + bf0)]    # merged L0
    last = h0
    for out_c in mlp[1:]:
        w = 0.2 * jax.random.normal(next(keys), (last, out_c))     # mlp_convs[i]
        cb = 0.1 * jax.random.normal(next(keys), (out_c,))
        layers.append(fold_bn(w, cb, *bn_params(out_c)))           # + mlp_bns[i]
        last = out_c
    return layers


def pack_params(layers):
    """Zero-pad channel widths to multiples of 128 (lane-dense), cast W->bf16."""
    packed = []
    in_dim = layers[0][0].shape[0]              # first layer input (3+C) unpadded
    for w, b in layers:
        out_pad = _round128(w.shape[1])
        w_p = _pad2(w, in_dim, out_pad).astype(jnp.bfloat16)
        b_p = jnp.pad(b, (0, out_pad - b.shape[0]))[None, :].astype(jnp.float32)
        packed.append((w_p, b_p))
        in_dim = out_pad                        # next layer input is padded width
    return packed


def pointnet_sa_cn2nor_forward(xyz, points, offset, packed_params, nsample, tm,
                               out_channels):
    """Forward pass of PointNetSetAbstractionCN2Nor (stride=1)."""
    n = xyz.shape[0]
    cin = 3 + points.shape[1]
    x = group_and_flatten(xyz, points, offset, nsample)   # [n*nsample, cin] bf16

    # Grid covers all points; tail block is padded with zero rows and the
    # corresponding outputs are sliced off below (no silently dropped points).
    n_blocks = pl.cdiv(n, tm)
    n_pad = n_blocks * tm
    if n_pad != n:
        x = jnp.pad(x, ((0, (n_pad - n) * nsample), (0, 0)))

    tk = tm * nsample
    h_pad = packed_params[-1][0].shape[1]                  # multiple of 128

    in_specs = [pl.BlockSpec((tk, cin), lambda i: (i, 0))]
    flat_wb = []
    for w, b in packed_params:
        in_specs.append(pl.BlockSpec(w.shape, lambda i: (0, 0)))
        in_specs.append(pl.BlockSpec(b.shape, lambda i: (0, 0)))
        flat_wb.extend([w, b])

    kernel = _sa_kernel(len(packed_params), tm, nsample)

    out = pl.pallas_call(
        kernel,
        out_shape=jax.ShapeDtypeStruct((n_pad, h_pad), jnp.float32),
        grid_spec=pltpu.PrefetchScalarGridSpec(
            num_scalar_prefetch=0,
            grid=(n_blocks,),
            in_specs=in_specs,
            out_specs=pl.BlockSpec((tm, h_pad), lambda i: (i, 0)),
        ),
        compiler_params=pltpu.CompilerParams(
            dimension_semantics=("parallel",),
            # Budget for large tk tiles (tk ~ 1k-4k rows in production);
            # <= physical VMEM on v7x (64 MiB) and on v5e/v6e (128 MiB).
            vmem_limit_bytes=64 * 1024 * 1024,
        ),
    )(x, *flat_wb)

    new_points = out[:n, :out_channels]    # drop tail rows + padded channels
    new_xyz = xyz                          # stride == 1 -> no subsampling
    new_offset = offset
    return [new_xyz, new_points, new_offset]


def _reference_mlp(x_bf16, packed_params, n, nsample, out_channels):
    """Pure-JAX reference for the fused MLP + max-pool hot path."""
    h = x_bf16
    num_layers = len(packed_params)
    for li, (w, b) in enumerate(packed_params):
        acc = jnp.dot(h, w, preferred_element_type=jnp.float32) + b
        acc = jnp.maximum(acc, 0.0)
        h = acc.astype(jnp.bfloat16) if li + 1 < num_layers else acc
    h = h.reshape(n, nsample, -1).max(axis=1)
    return h[:, :out_channels]


if __name__ == "__main__":
    key = jax.random.PRNGKey(0)
    N, C = 64, 4                 # 64 packed points (2 batches of 32), 4 feats
    nsample, TM = 16, 32         # 16-NN groups; TM=32 -> grid of 2 (feeds both
                                 # v7x TensorCores even at this tiny demo size)
    mlp = [32, 64]               # -> output features = 64

    kx, kp, kw = jax.random.split(key, 3)
    xyz = jax.random.normal(kx, (N, 3), dtype=jnp.float32)
    points = jax.random.normal(kp, (N, C), dtype=jnp.float32)
    offset = jnp.array([32, 64], dtype=jnp.int32)

    layers = init_params(kw, in_channel=C, mlp=mlp)
    packed = pack_params(layers)

    new_xyz, new_points, new_offset = pointnet_sa_cn2nor_forward(
        xyz, points, offset, packed, nsample, TM, out_channels=mlp[-1])
    jax.block_until_ready(new_points)

    # correctness check against a pure-JAX reference (same bf16/f32 recipe)
    x = group_and_flatten(xyz, points, offset, nsample)
    ref = _reference_mlp(x, packed, N, nsample, mlp[-1])
    if not jnp.allclose(new_points, ref, atol=2e-3, rtol=2e-3):
        err = float(jnp.max(jnp.abs(new_points - ref)))
        raise AssertionError(f"Pallas kernel output mismatch vs reference: {err}")

    assert new_xyz.shape == (N, 3)
    assert new_points.shape == (N, mlp[-1])
    print("KERNEL_OK")
</pallas_src>

<mosaic_0001>
module attributes {stable_mosaic.version = 11 : i64} {
  func.func @kernel(%arg0: i32, %arg1: memref<512x7xbf16, #tpu.memory_space<vmem>>, %arg2: memref<7x128xbf16, #tpu.memory_space<vmem>>, %arg3: memref<1x128xf32, #tpu.memory_space<vmem>>, %arg4: memref<128x128xbf16, #tpu.memory_space<vmem>>, %arg5: memref<1x128xf32, #tpu.memory_space<vmem>>, %arg6: memref<32x128xf32, #tpu.memory_space<vmem>>) attributes {dimension_semantics = [#tpu.dimension_semantics<parallel>], iteration_bounds = array<i64: 2>, scalar_prefetch = 0 : i64, scratch_operands = 0 : i64, tpu.core_type = #tpu.core_type<tc>, window_params = [{transform_indices = @transform_0, window_bounds = array<i64: 512, 7>}, {pipeline_mode = #tpu.pipeline_mode<synchronous>, transform_indices = @transform_1, window_bounds = array<i64: 7, 128>}, {pipeline_mode = #tpu.pipeline_mode<synchronous>, transform_indices = @transform_2, window_bounds = array<i64: 1, 128>}, {pipeline_mode = #tpu.pipeline_mode<synchronous>, transform_indices = @transform_3, window_bounds = array<i64: 128, 128>}, {pipeline_mode = #tpu.pipeline_mode<synchronous>, transform_indices = @transform_4, window_bounds = array<i64: 1, 128>}, {transform_indices = @transform_5, window_bounds = array<i64: 32, 128>}]} {
    %c0 = arith.constant 0 : index
    %c0_0 = arith.constant 0 : index
    %0 = vector.load %arg1[%c0, %c0_0] : memref<512x7xbf16, #tpu.memory_space<vmem>>, vector<512x7xbf16>
    %c0_1 = arith.constant 0 : index
    %c0_2 = arith.constant 0 : index
    %1 = vector.load %arg2[%c0_1, %c0_2] : memref<7x128xbf16, #tpu.memory_space<vmem>>, vector<7x128xbf16>
    %cst = arith.constant dense<0.000000e+00> : vector<512x128xf32>
    %2 = tpu.matmul %0, %1, %cst {dimension_numbers = #tpu.dot_dimension_numbers<[1], [0], [0], [1], [0, 0, 1, 1], [], []>} : vector<512x7xbf16>, vector<7x128xbf16>, vector<512x128xf32> -> vector<512x128xf32>
    %c0_3 = arith.constant 0 : index
    %c0_4 = arith.constant 0 : index
    %3 = vector.load %arg3[%c0_3, %c0_4] : memref<1x128xf32, #tpu.memory_space<vmem>>, vector<1x128xf32>
    %4 = vector.broadcast %3 : vector<1x128xf32> to vector<512x128xf32>
    %5 = arith.addf %2, %4 : vector<512x128xf32>
    %cst_5 = arith.constant 0.000000e+00 : f32
    %6 = vector.broadcast %cst_5 : f32 to vector<512x128xf32>
    %7 = arith.maximumf %5, %6 : vector<512x128xf32>
    %8 = arith.truncf %7 : vector<512x128xf32> to vector<512x128xbf16>
    %c0_6 = arith.constant 0 : index
    %c0_7 = arith.constant 0 : index
    %9 = vector.load %arg4[%c0_6, %c0_7] : memref<128x128xbf16, #tpu.memory_space<vmem>>, vector<128x128xbf16>
    %cst_8 = arith.constant dense<0.000000e+00> : vector<512x128xf32>
    %10 = tpu.matmul %8, %9, %cst_8 {dimension_numbers = #tpu.dot_dimension_numbers<[1], [0], [0], [1], [0, 0, 1, 1], [], []>} : vector<512x128xbf16>, vector<128x128xbf16>, vector<512x128xf32> -> vector<512x128xf32>
    %c0_9 = arith.constant 0 : index
    %c0_10 = arith.constant 0 : index
    %11 = vector.load %arg5[%c0_9, %c0_10] : memref<1x128xf32, #tpu.memory_space<vmem>>, vector<1x128xf32>
    %12 = vector.broadcast %11 : vector<1x128xf32> to vector<512x128xf32>
    %13 = arith.addf %10, %12 : vector<512x128xf32>
    %cst_11 = arith.constant 0.000000e+00 : f32
    %14 = vector.broadcast %cst_11 : f32 to vector<512x128xf32>
    %15 = arith.maximumf %13, %14 : vector<512x128xf32>
    %16 = vector.shape_cast %15 : vector<512x128xf32> to vector<32x16x128xf32>
    %cst_12 = arith.constant dense<0xFF800000> : vector<32x128xf32>
    %17 = vector.multi_reduction <maximumf>, %16, %cst_12 [1] : vector<32x16x128xf32> to vector<32x128xf32>
    %c0_13 = arith.constant 0 : index
    %c0_14 = arith.constant 0 : index
    %18 = vector.load %arg6[%c0_13, %c0_14] : memref<32x128xf32, #tpu.memory_space<vmem>>, vector<32x128xf32>
    tpu.vector_store %arg6[%c0_13, %c0_14], %17 {strides = array<i32>} : memref<32x128xf32, #tpu.memory_space<vmem>>, vector<32x128xf32>,
    return
  }
  func.func @transform_0(%arg0: i32) -> (i32, i32) {
    %c0_i32 = arith.constant 0 : i32
    %c0_i32_0 = arith.constant 0 : i32
    return %arg0, %c0_i32 : i32, i32
  }
  func.func @transform_1(%arg0: i32) -> (i32, i32) {
    %c0_i32 = arith.constant 0 : i32
    %c0_i32_0 = arith.constant 0 : i32
    %c0_i32_1 = arith.constant 0 : i32
    return %c0_i32, %c0_i32_0 : i32, i32
  }
  func.func @transform_2(%arg0: i32) -> (i32, i32) {
    %c0_i32 = arith.constant 0 : i32
    %c0_i32_0 = arith.constant 0 : i32
    %c0_i32_1 = arith.constant 0 : i32
    return %c0_i32, %c0_i32_0 : i32, i32
  }
  func.func @transform_3(%arg0: i32) -> (i32, i32) {
    %c0_i32 = arith.constant 0 : i32
    %c0_i32_0 = arith.constant 0 : i32
    %c0_i32_1 = arith.constant 0 : i32
    return %c0_i32, %c0_i32_0 : i32, i32
  }
  func.func @transform_4(%arg0: i32) -> (i32, i32) {
    %c0_i32 = arith.constant 0 : i32
    %c0_i32_0 = arith.constant 0 : i32
    %c0_i32_1 = arith.constant 0 : i32
    return %c0_i32, %c0_i32_0 : i32, i32
  }
  func.func @transform_5(%arg0: i32) -> (i32, i32) {
    %c0_i32 = arith.constant 0 : i32
    %c0_i32_0 = arith.constant 0 : i32
    return %arg0, %c0_i32 : i32, i32
  }
}

</mosaic_0001>

<bundles_post_ra>
// kernel: tpu_custom_call.1
= control target key start
LH: loop header
LB: loop body
LE: loop exit
PB: predicated region body
PF: predicated region fallthrough
CT: control target
= control target key end

     0   :  { %10 = vsyncpa [#allocation3], 0  ;;  %s3101_s0 = inlined_call_operand.hbm [shape: bf16[1024,7], index: 0, kind: input, shape index: {}]   ;;  %s3102_s1 = inlined_call_operand.hbm [shape: bf16[7,128], index: 1, kind: input, shape index: {}]   ;;  %s3103_s2 = inlined_call_operand.hbm [shape: f32[1,128], index: 2, kind: input, shape index: {}]   ;;  %s3104_s3 = inlined_call_operand.hbm [shape: bf16[128,128], index: 3, kind: input, shape index: {}]   ;;  %s3105_s4 = inlined_call_operand.hbm [shape: f32[1,128], index: 4, kind: input, shape index: {}]   ;;  %s3106_s5 = inlined_call_operand.hbm [shape: f32[64,128], index: 5, kind: output, shape index: {}]  }
   0x1   :  { %12 = vsyncpa [#allocation3 + $0x1], 0 }
   0x2   :  { %13 = vsyncpa [#allocation6], 0 }
   0x3   :  { %14 = vsyncpa [#allocation9], 0 }
   0x4   :  { %15 = vsyncpa [#allocation4], 0 }
   0x5   :  { %17 = vsyncpa [#allocation4 + $0x1], 0  ;;  %s2591_s18 = smov 0   ;;  %s2593_s19 = smov 0  }
   0x6   :  { %s2595_s20 = smov 0   ;;  %s2597_s21 = smov 0  }
   0x7 LB: > { %s2612_s22 = sadd.s32 4294967295, %s2548_s21   ;;  %s1867_s23 = sadd.s32 4294967294, %s2548_s21   ;;  %s2548_s21 = sphi %s2597_s21, %s3129_s21   ;;  %s2544_s20 = sphi %s2595_s20, %s3128_s20   ;;  %s2540_s19 = sphi %s2593_s19, %s3127_s19   ;;  %s2536_s18 = sphi %s2591_s18, %s3126_s18  }
   0x8   : > { %p43_p0 = scmp.ne.s32.totalorder %s2540_s19, %s2536_s18  ;;  %p3107_p1 = scmp.eq.s32.totalorder %s2612_s22, 0 }
   0x9   : > { %p157_p3 = scmp.eq.s32.totalorder %s1867_s23, 1  ;;  %p1868_p5 = scmp.ge.s32.totalorder %s2548_s21, 1 }
   0xa   : > { %p2621_p4 = por %p3107_p1, %p43_p0  ;;  %p164_p7 = scmp.lt.s32.totalorder %s2548_s21, 3 }
   0xb   : > { %p2626_p6 = por %p157_p3, %p43_p0  ;;  %s2550_s27 = smov [#allocation5]  }
   0xc   : > { %s3110_s24 = scalar_select %p2621_p4, 1, 0 }
   0xd   : > { %s3111_s25 = scalar_select %p2626_p6, 1, 0 }
   0xe   : > { %p2631_p8 = pnand %p1868_p5, %p164_p7  ;;  %s177_s28 = sshll.u32 %s2550_s27, 4  ;;  %s178_s28 = int_to_ptr.vmem [resolvable:$true] %s177_s28 }
   0xf   : > { %s2551_s29 = smov [#allocation8]   ;;  %s2552_s7 = smov [#allocation7]  }
  0x10   : > { %s3112_s26 = scalar_select %p2631_p8, 1, 0 }
  0x11   : > { %p2220_p10 = pneg %p2631_p8  ;;  %s198_s30 = sshll.u32 %s2551_s29, 4  ;;  %s2644_s30 = int_to_ptr.vmem [resolvable:$true] %s198_s30 }
  0x12   : > { %s2646_s8 = sshll.u32 %s2552_s7, 4  ;;  %s2332_s11 = scalar_lea.hbm %s3102_s1, 64  ;;  %s189_s8 = int_to_ptr.vmem [resolvable:$true] %s2646_s8 }
  0x13   : > { %p2640_p11 = pnand %p2220_p10, %p3107_p1  ;;  %p2333_p12 = scmp.ne.s32.totalorder %s3102_s1, %s2332_s11 }
  0x14   : > { %p2339_p5 = scmp.lt.u32.totalorder %s2332_s11, %s3102_s1 }
  0x15   : > { %p2656_p13 = pneg %p2640_p11 }
  0x17   : > { %p2335_p0 = pnand %p2656_p13, %p2333_p12 }
  0x19   : > { %p2336_p3 = pneg %p2335_p0 }
  0x1b   : > { %p2341_p7 = pnand %p2339_p5, %p2336_p3 }
  0x1d   : > { %2344 = shalt.err (!%p2341_p7)
}
  0x1e   : > { %s2345_s17 = scalar_lea.vmem %s178_s28, 64  ;;  %p2353_p2 = scmp.lt.s32.totalorder %s178_s28, %s178_s28 }
  0x1f   : > { %p2346_p10 = scmp.ne.s32.totalorder %s178_s28, %s2345_s17  ;;  %p2354_p6 = scmp.lt.s32.totalorder %s2345_s17, %s2345_s17 }
  0x21   : > { %p2348_p9 = pnand %p2346_p10, %p2656_p13  ;;  %p2355_p4 = por %p2354_p6, %p2353_p2 }
  0x23   : > { %p2349_p1 = pneg %p2348_p9 }
  0x25   : > { %p2356_p8 = pnand %p2355_p4, %p2349_p1 }
  0x27   : > { %2359 = shalt.err (!%p2356_p8)
}
  0x28   : > { %2223 = dma.hbm_to_vmem [thread:$0]  (!%p2640_p11), %s3102_s1, 64, %s178_s28, [#allocation6]  }
  0x29   : > { %s2360_s9 = scalar_lea.hbm %s3104_s3, 1024 }
  0x2a   : > { %p2361_p9 = scmp.ne.s32.totalorder %s3104_s3, %s2360_s9  ;;  %p2367_p1 = scmp.lt.u32.totalorder %s2360_s9, %s3104_s3 }
  0x2c   : > { %p2363_p12 = pnand %p2361_p9, %p2656_p13 }
  0x2e   : > { %p2364_p2 = pneg %p2363_p12 }
  0x30   : > { %p2369_p4 = pnand %p2367_p1, %p2364_p2 }
  0x32   : > { %2372 = shalt.err (!%p2369_p4)
}
  0x33   : > { %s2373_s28 = scalar_lea.vmem %s2644_s30, 1024  ;;  %p2381_p3 = scmp.lt.s32.totalorder %s2644_s30, %s2644_s30 }
  0x34   : > { %p2374_p6 = scmp.ne.s32.totalorder %s2644_s30, %s2373_s28  ;;  %p2382_p5 = scmp.lt.s32.totalorder %s2373_s28, %s2373_s28 }
  0x36   : > { %p2376_p8 = pnand %p2374_p6, %p2656_p13  ;;  %p2383_p7 = por %p2382_p5, %p2381_p3 }
  0x38   : > { %p2377_p0 = pneg %p2376_p8 }
  0x3a   : > { %p2384_p10 = pnand %p2383_p7, %p2377_p0 }
  0x3c   : > { %2387 = shalt.err (!%p2384_p10)
}
  0x3d   : > { %s2553_s15 = smov 64   ;;  %s2554_s16 = smov 4  }
  0x3e   : > { %2229 = dma.hbm_to_vmem [thread:$0]  (!%p2640_p11), %s3104_s3, 1024, %s2644_s30, [#allocation9], %s2553_s15, %s2553_s15, %s2554_s16  }
  0x3f   : > { %s2388_s7 = scalar_lea.hbm %s3103_s2, 16 }
  0x40   : > { %p2389_p9 = scmp.ne.s32.totalorder %s3103_s2, %s2388_s7  ;;  %p2395_p1 = scmp.lt.u32.totalorder %s2388_s7, %s3103_s2 }
  0x42   : > { %p2391_p12 = pnand %p2389_p9, %p2656_p13 }
  0x44   : > { %p2392_p2 = pneg %p2391_p12 }
  0x46   : > { %p2397_p4 = pnand %p2395_p1, %p2392_p2 }
  0x48   : > { %2400 = shalt.err (!%p2397_p4)
}
  0x49   : > { %s2401_s13 = scalar_lea.vmem %s189_s8, 16  ;;  %s2408_s30 = scalar_lea.vmem %s189_s8, 32 }
  0x4a   : > { %p2402_p6 = scmp.ne.s32.totalorder %s189_s8, %s2401_s13  ;;  %p2409_p3 = scmp.lt.s32.totalorder %s189_s8, %s189_s8 }
  0x4b   : > { %p2410_p5 = scmp.lt.s32.totalorder %s2408_s30, %s2401_s13 }
  0x4c   : > { %p2404_p8 = pnand %p2402_p6, %p2656_p13 }
  0x4d   : > { %p2411_p7 = por %p2410_p5, %p2409_p3 }
  0x4e   : > { %p2405_p0 = pneg %p2404_p8 }
  0x50   : > { %p2412_p10 = pnand %p2411_p7, %p2405_p0 }
  0x52   : > { %2415 = shalt.err (!%p2412_p10)
}
  0x53   : > { %2226 = dma.hbm_to_vmem [thread:$0]  (!%p2640_p11), %s3103_s2, 16, %s189_s8, [#allocation6]  }
  0x54   : > { %s2555_s23 = smov [#allocation10]   ;;  %s2416_s9 = scalar_lea.hbm %s3105_s4, 16 }
  0x55   : > { %s212_s27 = sshll.u32 %s2555_s23, 4  ;;  %p2417_p9 = scmp.ne.s32.totalorder %s3105_s4, %s2416_s9  ;;  %s213_s27 = int_to_ptr.vmem [resolvable:$true] %s212_s27 }
  0x56   : > { %p2423_p1 = scmp.lt.u32.totalorder %s2416_s9, %s3105_s4 }
  0x57   : > { %p2419_p12 = pnand %p2417_p9, %p2656_p13 }
  0x59   : > { %p2420_p2 = pneg %p2419_p12 }
  0x5b   : > { %p2425_p4 = pnand %p2423_p1, %p2420_p2 }
  0x5d   : > { %2428 = shalt.err (!%p2425_p4)
}
  0x5e   : > { %s2429_s8 = scalar_lea.vmem %s213_s27, 16  ;;  %s2436_s30 = scalar_lea.vmem %s213_s27, 32 }
  0x5f   : > { %p2430_p6 = scmp.ne.s32.totalorder %s213_s27, %s2429_s8  ;;  %p2437_p3 = scmp.lt.s32.totalorder %s213_s27, %s213_s27 }
  0x60   : > { %p2438_p5 = scmp.lt.s32.totalorder %s2436_s30, %s2429_s8 }
  0x61   : > { %p2432_p8 = pnand %p2430_p6, %p2656_p13 }
  0x62   : > { %p2439_p7 = por %p2438_p5, %p2437_p3 }
  0x63   : > { %p2433_p0 = pneg %p2432_p8 }
  0x65   : > { %p2440_p10 = pnand %p2439_p7, %p2433_p0 }
  0x67   : > { %2443 = shalt.err (!%p2440_p10)
}
  0x68   : > { %2232 = dma.hbm_to_vmem [thread:$0]  (!%p2640_p11), %s3105_s4, 16, %s213_s27, [#allocation9]  }
  0x69   : > { %s2736_s14 = sadd.s32 1, %s2548_s21   ;;  %s30_s23 = sadd.s32 1, %s2544_s20 }
  0x6a   : > { %s27_s6 = ssub.s32 %s2548_s21, %s2736_s14  ;;  %p37_p13 = scmp.ne.s32.totalorder %s2544_s20, %s2540_s19 }
  0x6b   : > { %p28_p9 = scmp.eq.s32.totalorder %s27_s6, 0  ;;  %p38_p12 = scmp.eq.s32.totalorder %s2548_s21, 0 }
  0x6c   : > { %p3115_p2 = scmp.eq.s32.totalorder %s2612_s22, 1  ;;  %p2245_p4 = scmp.lt.s32.totalorder %s2548_s21, 2 }
  0x6d   : > { %s2752_s7 = scalar_select %p28_p9, %s2544_s20, %s30_s23  }
  0x6e   : > { %p2746_p1 = por %p3115_p2, %p37_p13  ;;  %p39_p6 = por %p38_p12, %p37_p13 }
  0x6f   : > { %s223_s9 = sand.u32 1, %s2544_s20   ;;  %s1963_s27 = sshll.u32 %s2548_s21, 12 }
  0x70   : > { %s1874_s10 = sshll.u32 %s223_s9, 8  ;;  %s2759_s13 = scalar_lea.hbm %s3101_s0, %s1963_s27 }
  0x71   : > { %s227_s8 = scalar_lea.vmem [#allocation2], %s1874_s10  ;;  %p2763_p11 = pnand %p2245_p4, %p39_p6 }
  0x72   : > { %s234_s30 = sshll.u32 %s227_s8, 4  ;;  %s2767_s17 = scalar_lea.sflag [#allocation3], %s223_s9  ;;  %s2761_s30 = int_to_ptr.vmem [resolvable:$true] %s234_s30 }
  0x73   : > { %s2444_s23 = scalar_lea.hbm %s2759_s13, 4096  ;;  %p2446_p0 = pneg %p2763_p11 }
  0x74   : > { %p2445_p8 = scmp.ne.s32.totalorder %s2759_s13, %s2444_s23  ;;  %s2449_s27 = scalar_lea.hbm %s3101_s0, 8192 }
  0x75   : > { %p2450_p7 = scmp.lt.u32.totalorder %s2759_s13, %s3101_s0  ;;  %p2451_p10 = scmp.lt.u32.totalorder %s2449_s27, %s2444_s23 }
  0x76   : > { %p2447_p3 = pnand %p2446_p0, %p2445_p8  ;;  %p2453_p9 = scmp.lt.u32.totalorder %s2444_s23, %s2759_s13 }
  0x77   : > { %p2452_p13 = por %p2451_p10, %p2450_p7 }
  0x78   : > { %p2448_p5 = pneg %p2447_p3 }
  0x79   : > { %p2454_p12 = por %p2453_p9, %p2452_p13 }
  0x7b   : > { %p2455_p2 = pnand %p2454_p12, %p2448_p5 }
  0x7d   : > { %2458 = shalt.err (!%p2455_p2)
}
  0x7e   : > { %s2459_s9 = scalar_lea.vmem %s2761_s30, 4096  ;;  %s2556_s8 = smov [#allocation2]  }
  0x7f   : > { %p2460_p4 = scmp.ne.s32.totalorder %s2761_s30, %s2459_s9  ;;  %s2464_s6 = sshll.u32 %s2556_s8, 4  ;;  %s2465_s6 = int_to_ptr.vmem [resolvable:$false] %s2464_s6 }
  0x80   : > { %s2466_s10 = scalar_lea.vmem %s2465_s6, 8192  ;;  %p2467_p3 = scmp.lt.s32.totalorder %s2761_s30, %s2465_s6 }
  0x81   : > { %p2462_p6 = pnand %p2460_p4, %p2446_p0  ;;  %p2468_p7 = scmp.lt.s32.totalorder %s2466_s10, %s2459_s9 }
  0x83   : > { %p2463_p8 = pneg %p2462_p6  ;;  %p2469_p10 = por %p2468_p7, %p2467_p3 }
  0x85   : > { %p2470_p13 = pnand %p2469_p10, %p2463_p8 }
  0x87   : > { %2473 = shalt.err (!%p2470_p13)
}
  0x88   : > { %2236 = dma.hbm_to_vmem [thread:$0]  (!%p2763_p11), %s2759_s13, 4096, %s2761_s30, %s2767_s17, %s2553_s15, %s2553_s15, %s2554_s16  }
  0x89   : > { %p3118_p0 = scmp.ne.s32.totalorder %s3112_s26, 0 }
  0x8a   : > { %s2801_s23 = sand.u32 (!%p3118_p0), 1, %s2540_s19   ;;  %p3119_p5 = scmp.ne.s32.totalorder (!%p3118_p0), %s3110_s24, 0 }
  0x8b   : > { %246 = sbr.rel (%p3118_p0) target bundleno = 755 (0x2f3), region = 40  ;;  %s1878_s27 = sshll.u32 (!%p3118_p0), %s2801_s23, 8 }
  0x8c   : > { %s249_s11 = scalar_lea.sflag (!%p3118_p0), [#allocation3], %s2801_s23  ;;  %s2805_s12 = scalar_lea.vmem (!%p3118_p0), [#allocation2], %s1878_s27 }
  0x92   : > { %2519 = dma.done.wait (%p3119_p5), %s249_s11, 4096  }
  0x93   : > { %2521 = vsyncadd (%p3119_p5), %s249_s11, 4294963200  ;;  %p3120_p11 = scmp.eq.s32.totalorder %s2612_s22, 0 }
  0x95   : > { %2523 = dma.done.wait (%p3120_p11), [#allocation6], 80   ;;  %p3121_p9 = pmov %p3120_p11 }
  0x97   : > { %2525 = vsyncadd (%p3121_p9), [#allocation6], 4294967216  ;;  %p3122_p12 = pmov %p3121_p9 }
  0x98   : > { %p3123_p2 = pmov %p3121_p9 }
  0x99   : > { %2527 = dma.done.wait (%p3122_p12), [#allocation9], 1040  }
  0x9a   : > { %2529 = vsyncadd (%p3123_p2), [#allocation9], 4294966256  ;;  %vm627_vm0 = vcmask 1042432   ;;  %vm628_vm1 = vcmask 1043456   ;;  %v2557_v0 = vmov 65535   ;;  %vm530_vm2 = vcmask 56320  }
  0x9b   : > { %v629_v1 = vsel %vm627_vm0, 4294967295, %v2557_v0  ;;  %v362_v3 = vld [vmem:[#allocation5] sm:$0xf]  ;;  %v2293_v6 = vld [vmem:[%s2805_s12 + $0x8] sm:$0xff]   ;;  %v2294_v7 = vld [vmem:[%s2805_s12 + $0x10] sm:$0xff]   ;;  %vm1699_vm3 = vcmask 1041409  }
  0x9c   : > { %v630_v2 = vsel %vm628_vm1, %v629_v1, 0  ;;  %v2292_v5 = vld [vmem:[%s2805_s12] sm:$0xff]   ;;  %v2295_v8 = vld [vmem:[%s2805_s12 + $0x18] sm:$0xff]   ;;  %v2297_v10 = vld [vmem:[%s2805_s12 + $0x28] sm:$0xff]   ;;  %vm1701_vm4 = vcmask 1042434   ;;  %vm1703_vm5 = vcmask 1043459  }
  0x9d   : > { %v632_v4 = vand.u32 %v630_v2, %v362_v3  ;;  %2040 = vmatprep.mubr.msk.bf16.mxu0 %vm530_vm2, %v2292_v5  ;;  %v2296_v9 = vld [vmem:[%s2805_s12 + $0x20] sm:$0xff]   ;;  %v2298_v11 = vld [vmem:[%s2805_s12 + $0x30] sm:$0xff]   ;;  %v2299_v12 = vld [vmem:[%s2805_s12 + $0x38] sm:$0xff]   ;;  %vm1705_vm6 = vcmask 1044484   ;;  %vm1707_vm7 = vcmask 1045509   ;;  %s1883_s24 = sshll.u32 %s2801_s23, 5 }
  0x9e   : > { %v2300_v13 = vld [vmem:[%s2805_s12 + $0x40] sm:$0xff]   ;;  %v2325_v15 = vld [vmem:[#allocation8 + $0x8] sm:$0xff]   ;;  %v2326_v18 = vld [vmem:[#allocation8 + $0x10] sm:$0xff]   ;;  %vm1709_vm8 = vcmask 1046534   ;;  %vm1711_vm9 = vcmask 1047559   ;;  %s2983_s26 = scalar_lea.vmem [#allocation11], %s1883_s24 }
  0x9f   : > { %2038 = vmatprep.subr.bf16.mxu0 %v632_v4  ;;  %v2324_v14 = vld [vmem:[#allocation8] sm:$0xff]   ;;  %v2302_v17 = vld [vmem:[%s2805_s12 + $0x50] sm:$0xff]   ;;  %v2327_v19 = vld [vmem:[#allocation8 + $0x18] sm:$0xff]   ;;  %s1964_s15 = sshll.u32 %s2612_s22, 9  ;;  %s1756_s16 = sshll.u32 %s2983_s26, 4  ;;  %s3054_s16 = int_to_ptr.vmem [resolvable:$true] %s1756_s16 }
  0xa0   : > { %2039 = vmatpush3.bf16.msra.mxu0 %v632_v4  ;;  %v2301_v16 = vld [vmem:[%s2805_s12 + $0x48] sm:$0xff]   ;;  %2184 = vmatprep.subr.bf16.mxu1 %v2324_v14  ;;  %v2303_v20 = vld [vmem:[%s2805_s12 + $0x58] sm:$0xff]   ;;  %v2304_v21 = vld [vmem:[%s2805_s12 + $0x60] sm:$0xff]   ;;  %s3052_s28 = scalar_lea.hbm %s3106_s5, %s1964_s15  ;;  %s1743_s17 = scalar_lea.sflag [#allocation4], %s2801_s23 }
  0xa1   : > { %2104 = vmatprep.subr.bf16.mxu0 %v2324_v14  ;;  %2192 = vmatpush3.bf16.msra.mxu1 %v2324_v14  ;;  %v2328_v22 = vld [vmem:[#allocation8 + $0x20] sm:$0xff]   ;;  %v2329_v23 = vld [vmem:[#allocation8 + $0x28] sm:$0xff]   ;;  %v2307_v26 = vld [vmem:[%s2805_s12 + $0x78] sm:$0xff]   ;;  %s2474_s22 = scalar_lea.vmem %s3054_s16, 512  ;;  %s2558_s9 = smov [#allocation11]  }
  0xa2   : > { %2185 = vmatprep.subr.bf16.mxu1 %v2325_v15  ;;  %v2305_v24 = vld [vmem:[%s2805_s12 + $0x68] sm:$0xff]   ;;  %v2306_v25 = vld [vmem:[%s2805_s12 + $0x70] sm:$0xff]   ;;  %v2308_v27 = vld [vmem:[%s2805_s12 + $0x80] sm:$0xff]   ;;  %p2475_p4 = scmp.ne.s32.totalorder %s3054_s16, %s2474_s22  ;;  %s2478_s8 = sshll.u32 %s2558_s9, 4  ;;  %s2479_s8 = int_to_ptr.vmem [resolvable:$false] %s2478_s8 }
  0xa3   : > { %2041 = vmatmul.mubr.msk.bf16.vlgmr.msra.gmra.mrb[0].mxu0 %vm530_vm2, %v2293_v6  ;;  %v2309_v28 = vld [vmem:[%s2805_s12 + $0x88] sm:$0xff]   ;;  %v2310_v29 = vld [vmem:[%s2805_s12 + $0x90] sm:$0xff]   ;;  %v2311_v30 = vld [vmem:[%s2805_s12 + $0x98] sm:$0xff]   ;;  %s2480_s6 = scalar_lea.vmem %s2479_s8, 1024  ;;  %p2481_p3 = scmp.lt.s32.totalorder %s3054_s16, %s2479_s8 }
  0xa4   : > { %2044 = vmatprep.mubr.msk.bf16.mxu0 %vm530_vm2, %v2294_v7  ;;  %2105 = vmatpush3.bf16.msra.mxu0 %v2324_v14  ;;  %v2312_v31 = vld [vmem:[%s2805_s12 + $0xa0] sm:$0xff]   ;;  %v2313_v32 = vld [vmem:[%s2805_s12 + $0xa8] sm:$0xff]   ;;  %v2314_v33 = vld [vmem:[%s2805_s12 + $0xb0] sm:$0xff]   ;;  %p2476_p6 = pnand %p2475_p4, %p2746_p1  ;;  %p2482_p7 = scmp.lt.s32.totalorder %s2480_s6, %s2474_s22 }
  0xa5   : > { %2106 = vmatprep.subr.bf16.mxu0 %v2325_v15  ;;  %2193 = vmatpush3.bf16.msra.mxu1 %v2325_v15  ;;  %v2315_v34 = vld [vmem:[%s2805_s12 + $0xb8] sm:$0xff]   ;;  %v2316_v36 = vld [vmem:[%s2805_s12 + $0xc0] sm:$0xff]   ;;  %v2317_v38 = vld [vmem:[%s2805_s12 + $0xc8] sm:$0xff]  }
  0xa6   : > { %2186 = vmatprep.subr.bf16.mxu1 %v2326_v18  ;;  %v2330_v35 = vld [vmem:[#allocation8 + $0x30] sm:$0xff]   ;;  %v2331_v37 = vld [vmem:[#allocation8 + $0x38] sm:$0xff]   ;;  %v2321_v42 = vld [vmem:[%s2805_s12 + $0xe8] sm:$0xff]   ;;  %p2477_p8 = pneg %p2476_p6  ;;  %p2483_p10 = por %p2482_p7, %p2481_p3 }
  0xa7   : > { %v2318_v39 = vld [vmem:[%s2805_s12 + $0xd0] sm:$0xff]   ;;  %v2319_v40 = vld [vmem:[%s2805_s12 + $0xd8] sm:$0xff]   ;;  %v2320_v41 = vld [vmem:[%s2805_s12 + $0xe0] sm:$0xff]  }
  0xa8   : > { %2107 = vmatpush3.bf16.msra.mxu0 %v2325_v15  ;;  %v2322_v43 = vld [vmem:[%s2805_s12 + $0xf0] sm:$0xff]   ;;  %v2323_v44 = vld [vmem:[%s2805_s12 + $0xf8] sm:$0xff]   ;;  %v2883_v45 = vld [vmem:[#allocation7] ss:$0 sm:$0xff]  ;;  %p2484_p13 = pnand %p2483_p10, %p2477_p8 }
  0xa9   : > { %2108 = vmatprep.subr.bf16.mxu0 %v2326_v18  ;;  %2194 = vmatpush3.bf16.msra.mxu1 %v2326_v18 }
  0xaa   : > { %2187 = vmatprep.subr.bf16.mxu1 %v2327_v19 }
  0xab   : > { %2045 = vmatmul.mubr.msk.bf16.gmra.mrb[4].mxu0 %vm530_vm2, %v2295_v8 }
  0xac   : > { %2048 = vmatprep.mubr.msk.bf16.mxu0 %vm530_vm2, %v2296_v9  ;;  %2109 = vmatpush3.bf16.msra.mxu0 %v2326_v18 }
  0xad   : > { %2110 = vmatprep.subr.bf16.mxu0 %v2327_v19  ;;  %2195 = vmatpush3.bf16.msra.mxu1 %v2327_v19 }
  0xae   : > { %2188 = vmatprep.subr.bf16.mxu1 %v2328_v22 }
  0xb0   : > { %2111 = vmatpush3.bf16.msra.mxu0 %v2327_v19 }
  0xb1   : > { %2112 = vmatprep.subr.bf16.mxu0 %v2328_v22  ;;  %2196 = vmatpush3.bf16.msra.mxu1 %v2328_v22 }
  0xb2   : > { %2189 = vmatprep.subr.bf16.mxu1 %v2329_v23 }
  0xb3   : > { %2049 = vmatmul.mubr.msk.bf16.gmra.mrb[8].mxu0 %vm530_vm2, %v2297_v10 }
  0xb4   : > { %2052 = vmatprep.mubr.msk.bf16.mxu0 %vm530_vm2, %v2298_v11  ;;  %2113 = vmatpush3.bf16.msra.mxu0 %v2328_v22 }
  0xb5   : > { %2114 = vmatprep.subr.bf16.mxu0 %v2329_v23  ;;  %2197 = vmatpush3.bf16.msra.mxu1 %v2329_v23 }
  0xb6   : > { %2190 = vmatprep.subr.bf16.mxu1 %v2330_v35 }
  0xb8   : > { %2115 = vmatpush3.bf16.msra.mxu0 %v2329_v23 }
  0xb9   : > { %2116 = vmatprep.subr.bf16.mxu0 %v2330_v35  ;;  %2198 = vmatpush3.bf16.msra.mxu1 %v2330_v35 }
  0xba   : > { %2191 = vmatprep.subr.bf16.mxu1 %v2331_v37 }
  0xbb   : > { %2053 = vmatmul.mubr.msk.bf16.gmra.mrb[12].mxu0 %vm530_vm2, %v2299_v12 }
  0xbc   : > { %2056 = vmatprep.mubr.msk.bf16.mxu0 %vm530_vm2, %v2300_v13  ;;  %2117 = vmatpush3.bf16.msra.mxu0 %v2330_v35 }
  0xbd   : > { %2118 = vmatprep.subr.bf16.mxu0 %v2331_v37  ;;  %2199 = vmatpush3.bf16.msra.mxu1 %v2331_v37 }
  0xc0   : > { %2119 = vmatpush3.bf16.msra.mxu0 %v2331_v37 }
  0xc3   : > { %2057 = vmatmul.mubr.msk.bf16.gmra.mrb[16].mxu0 %vm530_vm2, %v2301_v16 }
  0xc4   : > { %2060 = vmatprep.mubr.msk.bf16.mxu0 %vm530_vm2, %v2302_v17 }
  0xcb   : > { %2061 = vmatmul.mubr.msk.bf16.gmra.mrb[20].mxu0 %vm530_vm2, %v2303_v20 }
  0xcc   : > { %2064 = vmatprep.mubr.msk.bf16.mxu0 %vm530_vm2, %v2304_v21 }
  0xd3   : > { %2065 = vmatmul.mubr.msk.bf16.gmra.mrb[24].mxu0 %vm530_vm2, %v2305_v24 }
  0xd4   : > { %2068 = vmatprep.mubr.msk.bf16.mxu0 %vm530_vm2, %v2306_v25 }
  0xdb   : > { %2069 = vmatmul.mubr.msk.bf16.gmra.mrb[28].mxu0 %vm530_vm2, %v2307_v26 }
  0xdc   : > { %2072 = vmatprep.mubr.msk.bf16.mxu0 %vm530_vm2, %v2308_v27 }
  0xe3   : > { %2073 = vmatmul.mubr.msk.bf16.gmra.mrb[32].mxu0 %vm530_vm2, %v2309_v28 }
  0xe4   : > { %2076 = vmatprep.mubr.msk.bf16.mxu0 %vm530_vm2, %v2310_v29 }
  0xeb   : > { %2077 = vmatmul.mubr.msk.bf16.gmra.mrb[36].mxu0 %vm530_vm2, %v2311_v30 }
  0xec   : > { %2080 = vmatprep.mubr.msk.bf16.mxu0 %vm530_vm2, %v2312_v31 }
  0xf3   : > { %2081 = vmatmul.mubr.msk.bf16.gmra.mrb[40].mxu0 %vm530_vm2, %v2313_v32 }
  0xf4   : > { %2084 = vmatprep.mubr.msk.bf16.mxu0 %vm530_vm2, %v2314_v33 }
  0xfb   : > { %2085 = vmatmul.mubr.msk.bf16.gmra.mrb[44].mxu0 %vm530_vm2, %v2315_v34 }
  0xfc   : > { %2088 = vmatprep.mubr.msk.bf16.mxu0 %vm530_vm2, %v2316_v36 }
 0x103   : > { %2089 = vmatmul.mubr.msk.bf16.gmra.mrb[48].mxu0 %vm530_vm2, %v2317_v38 }
 0x104   : > { %2092 = vmatprep.mubr.msk.bf16.mxu0 %vm530_vm2, %v2318_v39 }
 0x10b   : > { %2093 = vmatmul.mubr.msk.bf16.gmra.mrb[52].mxu0 %vm530_vm2, %v2319_v40 }
 0x10c   : > { %2096 = vmatprep.mubr.msk.bf16.mxu0 %vm530_vm2, %v2320_v41 }
 0x113   : > { %2097 = vmatmul.mubr.msk.bf16.gmra.mrb[56].mxu0 %vm530_vm2, %v2321_v42 }
 0x114   : > { %2100 = vmatprep.mubr.msk.bf16.mxu0 %vm530_vm2, %v2322_v43 }
 0x11b   : > { %2101 = vmatmul.mubr.msk.bf16.gmra.mrb[60].mxu0 %vm530_vm2, %v2323_v44 }
 0x176   : > { %v2042_v46 = vpop.f32.mrb[0].mxu0 }
 0x177   : > { %v677_v47 = vadd.f32 %v2042_v46, %v2883_v45  ;;  %v668_v48 = vpop.f32.mrb[1].mxu0 }
 0x178   : > { %v669_v49 = vadd.f32 %v2883_v45, %v668_v48  ;;  %v2043_v50 = vpop.f32.mrb[2].mxu0 }
 0x179   : > { %v680_v51 = vadd.f32 %v2043_v50, %v2883_v45  ;;  %v671_v52 = vpop.f32.mrb[3].mxu0  ;;  %v925_v54 = vmax.f32 %v677_v47, 0.0 }
 0x17a   : > { %v672_v53 = vadd.f32 %v2883_v45, %v671_v52  ;;  %v923_v56 = vmax.f32 %v669_v49, 0.0 }
 0x17b   : > { %v926_v55 = vmax.f32 %v680_v51, 0.0 }
 0x17c   : > { %v924_v57 = vmax.f32 %v672_v53, 0.0 }
 0x17d   : > { %v988_v58 = vpack.c.bf16 %v926_v55, %v925_v54 }
 0x17e   : > { %v987_v59 = vpack.c.bf16 %v924_v57, %v923_v56  ;;  %v2046_v60 = vpop.f32.mrb[4].mxu0 }
 0x17f   : > { %v693_v61 = vadd.f32 %v2046_v60, %v2883_v45  ;;  %v684_v62 = vpop.f32.mrb[5].mxu0 }
 0x180   : > { %v685_v63 = vadd.f32 %v2883_v45, %v684_v62  ;;  %v2047_v0 = vpop.f32.mrb[6].mxu0  ;;  %2120 = vmatprep.mubr.bf16.mxu0 %v987_v59 }
 0x181   : > { %v696_v1 = vadd.f32 %v2047_v0, %v2883_v45  ;;  %v687_v2 = vpop.f32.mrb[7].mxu0  ;;  %2121 = vmatmul.mubr.bf16.vlgmr.msra.gmra.mrb[64].mxu0 %v988_v58  ;;  %v929_v4 = vmax.f32 %v693_v61, 0.0 }
 0x182   : > { %v688_v3 = vadd.f32 %v2883_v45, %v687_v2  ;;  %v927_v6 = vmax.f32 %v685_v63, 0.0 }
 0x183   : > { %v930_v5 = vmax.f32 %v696_v1, 0.0 }
 0x184   : > { %v928_v7 = vmax.f32 %v688_v3, 0.0 }
 0x185   : > { %v990_v8 = vpack.c.bf16 %v930_v5, %v929_v4 }
 0x186   : > { %v2050_v9 = vpop.f32.mrb[8].mxu0  ;;  %v989_v10 = vpack.c.bf16 %v928_v7, %v927_v6 }
 0x187   : > { %v709_v11 = vadd.f32 %v2050_v9, %v2883_v45  ;;  %v700_v12 = vpop.f32.mrb[9].mxu0 }
 0x188   : > { %v701_v13 = vadd.f32 %v2883_v45, %v700_v12  ;;  %v2051_v14 = vpop.f32.mrb[10].mxu0  ;;  %2124 = vmatprep.mubr.bf16.mxu1 %v989_v10 }
 0x189   : > { %v712_v15 = vadd.f32 %v2051_v14, %v2883_v45  ;;  %v703_v16 = vpop.f32.mrb[11].mxu0  ;;  %2125 = vmatmul.mubr.bf16.vlgmr.msra.gmra.mrb[0].mxu1 %v990_v8  ;;  %v933_v18 = vmax.f32 %v709_v11, 0.0 }
 0x18a   : > { %v704_v17 = vadd.f32 %v2883_v45, %v703_v16  ;;  %v931_v20 = vmax.f32 %v701_v13, 0.0 }
 0x18b   : > { %v934_v19 = vmax.f32 %v712_v15, 0.0 }
 0x18c   : > { %v932_v21 = vmax.f32 %v704_v17, 0.0 }
 0x18d   : > { %v992_v22 = vpack.c.bf16 %v934_v19, %v933_v18 }
 0x18e   : > { %v991_v23 = vpack.c.bf16 %v932_v21, %v931_v20  ;;  %v2054_v24 = vpop.f32.mrb[12].mxu0 }
 0x18f   : > { %v725_v25 = vadd.f32 %v2054_v24, %v2883_v45  ;;  %v716_v26 = vpop.f32.mrb[13].mxu0 }
 0x190   : > { %v717_v27 = vadd.f32 %v2883_v45, %v716_v26  ;;  %v2055_v28 = vpop.f32.mrb[14].mxu0  ;;  %2128 = vmatprep.mubr.bf16.mxu1 %v991_v23 }
 0x191   : > { %v728_v29 = vadd.f32 %v2055_v28, %v2883_v45  ;;  %v719_v30 = vpop.f32.mrb[15].mxu0  ;;  %2129 = vmatmul.mubr.bf16.gmra.mrb[4].mxu1 %v992_v22  ;;  %v937_v32 = vmax.f32 %v725_v25, 0.0 }
 0x192   : > { %v720_v31 = vadd.f32 %v2883_v45, %v719_v30  ;;  %v935_v34 = vmax.f32 %v717_v27, 0.0 }
 0x193   : > { %v938_v33 = vmax.f32 %v728_v29, 0.0 }
 0x194   : > { %v936_v35 = vmax.f32 %v720_v31, 0.0 }
 0x195   : > { %v994_v36 = vpack.c.bf16 %v938_v33, %v937_v32 }
 0x196   : > { %v993_v37 = vpack.c.bf16 %v936_v35, %v935_v34  ;;  %v2058_v38 = vpop.f32.mrb[16].mxu0 }
 0x197   : > { %v741_v39 = vadd.f32 %v2058_v38, %v2883_v45  ;;  %v732_v40 = vpop.f32.mrb[17].mxu0 }
 0x198   : > { %v733_v41 = vadd.f32 %v2883_v45, %v732_v40  ;;  %v2059_v42 = vpop.f32.mrb[18].mxu0  ;;  %2132 = vmatprep.mubr.bf16.mxu1 %v993_v37 }
 0x199   : > { %v744_v43 = vadd.f32 %v2059_v42, %v2883_v45  ;;  %v735_v44 = vpop.f32.mrb[19].mxu0  ;;  %2133 = vmatmul.mubr.bf16.gmra.mrb[8].mxu1 %v994_v36  ;;  %v941_v47 = vmax.f32 %v741_v39, 0.0 }
 0x19a   : > { %v736_v46 = vadd.f32 %v2883_v45, %v735_v44  ;;  %v939_v49 = vmax.f32 %v733_v41, 0.0 }
 0x19b   : > { %v942_v48 = vmax.f32 %v744_v43, 0.0 }
 0x19c   : > { %v940_v50 = vmax.f32 %v736_v46, 0.0 }
 0x19d   : > { %v996_v51 = vpack.c.bf16 %v942_v48, %v941_v47 }
 0x19e   : > { %v995_v52 = vpack.c.bf16 %v940_v50, %v939_v49  ;;  %v2062_v53 = vpop.f32.mrb[20].mxu0 }
 0x19f   : > { %v757_v54 = vadd.f32 %v2062_v53, %v2883_v45  ;;  %v748_v55 = vpop.f32.mrb[21].mxu0 }
 0x1a0   : > { %v749_v56 = vadd.f32 %v2883_v45, %v748_v55  ;;  %v2063_v57 = vpop.f32.mrb[22].mxu0  ;;  %2136 = vmatprep.mubr.bf16.mxu1 %v995_v52 }
 0x1a1   : > { %v760_v58 = vadd.f32 %v2063_v57, %v2883_v45  ;;  %v751_v59 = vpop.f32.mrb[23].mxu0  ;;  %2137 = vmatmul.mubr.bf16.gmra.mrb[12].mxu1 %v996_v51  ;;  %v945_v61 = vmax.f32 %v757_v54, 0.0 }
 0x1a2   : > { %v752_v60 = vadd.f32 %v2883_v45, %v751_v59  ;;  %v943_v63 = vmax.f32 %v749_v56, 0.0 }
 0x1a3   : > { %v946_v62 = vmax.f32 %v760_v58, 0.0 }
 0x1a4   : > { %v944_v0 = vmax.f32 %v752_v60, 0.0 }
 0x1a5   : > { %v998_v1 = vpack.c.bf16 %v946_v62, %v945_v61 }
 0x1a6   : > { %v997_v2 = vpack.c.bf16 %v944_v0, %v943_v63  ;;  %v2066_v3 = vpop.f32.mrb[24].mxu0 }
 0x1a7   : > { %v773_v4 = vadd.f32 %v2066_v3, %v2883_v45  ;;  %v764_v5 = vpop.f32.mrb[25].mxu0 }
 0x1a8   : > { %v765_v6 = vadd.f32 %v2883_v45, %v764_v5  ;;  %v2067_v7 = vpop.f32.mrb[26].mxu0  ;;  %2140 = vmatprep.mubr.bf16.mxu1 %v997_v2 }
 0x1a9   : > { %v776_v8 = vadd.f32 %v2067_v7, %v2883_v45  ;;  %v767_v9 = vpop.f32.mrb[27].mxu0  ;;  %2141 = vmatmul.mubr.bf16.gmra.mrb[16].mxu1 %v998_v1  ;;  %v949_v11 = vmax.f32 %v773_v4, 0.0 }
 0x1aa   : > { %v768_v10 = vadd.f32 %v2883_v45, %v767_v9  ;;  %v947_v13 = vmax.f32 %v765_v6, 0.0 }
 0x1ab   : > { %v950_v12 = vmax.f32 %v776_v8, 0.0 }
 0x1ac   : > { %v948_v14 = vmax.f32 %v768_v10, 0.0 }
 0x1ad   : > { %v1000_v15 = vpack.c.bf16 %v950_v12, %v949_v11 }
 0x1ae   : > { %v999_v16 = vpack.c.bf16 %v948_v14, %v947_v13  ;;  %v2070_v17 = vpop.f32.mrb[28].mxu0 }
 0x1af   : > { %v789_v18 = vadd.f32 %v2070_v17, %v2883_v45  ;;  %v780_v19 = vpop.f32.mrb[29].mxu0 }
 0x1b0   : > { %v781_v20 = vadd.f32 %v2883_v45, %v780_v19  ;;  %v2071_v21 = vpop.f32.mrb[30].mxu0  ;;  %2144 = vmatprep.mubr.bf16.mxu1 %v999_v16 }
 0x1b1   : > { %v792_v22 = vadd.f32 %v2071_v21, %v2883_v45  ;;  %v783_v23 = vpop.f32.mrb[31].mxu0  ;;  %2145 = vmatmul.mubr.bf16.gmra.mrb[20].mxu1 %v1000_v15  ;;  %v953_v25 = vmax.f32 %v789_v18, 0.0 }
 0x1b2   : > { %v784_v24 = vadd.f32 %v2883_v45, %v783_v23  ;;  %v951_v27 = vmax.f32 %v781_v20, 0.0 }
 0x1b3   : > { %v954_v26 = vmax.f32 %v792_v22, 0.0 }
 0x1b4   : > { %v952_v28 = vmax.f32 %v784_v24, 0.0 }
 0x1b5   : > { %v1002_v29 = vpack.c.bf16 %v954_v26, %v953_v25 }
 0x1b6   : > { %v1001_v30 = vpack.c.bf16 %v952_v28, %v951_v27  ;;  %v2074_v31 = vpop.f32.mrb[32].mxu0 }
 0x1b7   : > { %v805_v32 = vadd.f32 %v2074_v31, %v2883_v45  ;;  %v796_v33 = vpop.f32.mrb[33].mxu0 }
 0x1b8   : > { %v797_v34 = vadd.f32 %v2883_v45, %v796_v33  ;;  %v2075_v35 = vpop.f32.mrb[34].mxu0  ;;  %2148 = vmatprep.mubr.bf16.mxu1 %v1001_v30 }
 0x1b9   : > { %v808_v36 = vadd.f32 %v2075_v35, %v2883_v45  ;;  %v799_v37 = vpop.f32.mrb[35].mxu0  ;;  %2149 = vmatmul.mubr.bf16.gmra.mrb[24].mxu1 %v1002_v29  ;;  %v957_v39 = vmax.f32 %v805_v32, 0.0 }
 0x1ba   : > { %v800_v38 = vadd.f32 %v2883_v45, %v799_v37  ;;  %v955_v41 = vmax.f32 %v797_v34, 0.0 }
 0x1bb   : > { %v958_v40 = vmax.f32 %v808_v36, 0.0 }
 0x1bc   : > { %v956_v42 = vmax.f32 %v800_v38, 0.0 }
 0x1bd   : > { %v1004_v43 = vpack.c.bf16 %v958_v40, %v957_v39 }
 0x1be   : > { %v1003_v44 = vpack.c.bf16 %v956_v42, %v955_v41  ;;  %v2078_v46 = vpop.f32.mrb[36].mxu0 }
 0x1bf   : > { %v821_v47 = vadd.f32 %v2078_v46, %v2883_v45  ;;  %v812_v48 = vpop.f32.mrb[37].mxu0 }
 0x1c0   : > { %v813_v49 = vadd.f32 %v2883_v45, %v812_v48  ;;  %v2079_v50 = vpop.f32.mrb[38].mxu0  ;;  %2152 = vmatprep.mubr.bf16.mxu1 %v1003_v44 }
 0x1c1   : > { %v824_v51 = vadd.f32 %v2079_v50, %v2883_v45  ;;  %v815_v52 = vpop.f32.mrb[39].mxu0  ;;  %2153 = vmatmul.mubr.bf16.gmra.mrb[28].mxu1 %v1004_v43  ;;  %v961_v54 = vmax.f32 %v821_v47, 0.0 }
 0x1c2   : > { %v816_v53 = vadd.f32 %v2883_v45, %v815_v52  ;;  %v959_v56 = vmax.f32 %v813_v49, 0.0 }
 0x1c3   : > { %v962_v55 = vmax.f32 %v824_v51, 0.0 }
 0x1c4   : > { %v960_v57 = vmax.f32 %v816_v53, 0.0 }
 0x1c5   : > { %v1006_v58 = vpack.c.bf16 %v962_v55, %v961_v54 }
 0x1c6   : > { %v1005_v59 = vpack.c.bf16 %v960_v57, %v959_v56  ;;  %v2082_v60 = vpop.f32.mrb[40].mxu0 }
 0x1c7   : > { %v837_v61 = vadd.f32 %v2082_v60, %v2883_v45  ;;  %v828_v62 = vpop.f32.mrb[41].mxu0 }
 0x1c8   : > { %v829_v63 = vadd.f32 %v2883_v45, %v828_v62  ;;  %v2083_v0 = vpop.f32.mrb[42].mxu0  ;;  %2156 = vmatprep.mubr.bf16.mxu1 %v1005_v59 }
 0x1c9   : > { %v840_v1 = vadd.f32 %v2083_v0, %v2883_v45  ;;  %v831_v2 = vpop.f32.mrb[43].mxu0  ;;  %2157 = vmatmul.mubr.bf16.gmra.mrb[32].mxu1 %v1006_v58  ;;  %v965_v4 = vmax.f32 %v837_v61, 0.0 }
 0x1ca   : > { %v832_v3 = vadd.f32 %v2883_v45, %v831_v2  ;;  %v963_v6 = vmax.f32 %v829_v63, 0.0 }
 0x1cb   : > { %v966_v5 = vmax.f32 %v840_v1, 0.0 }
 0x1cc   : > { %v964_v7 = vmax.f32 %v832_v3, 0.0 }
 0x1cd   : > { %v1008_v8 = vpack.c.bf16 %v966_v5, %v965_v4 }
 0x1ce   : > { %v1007_v9 = vpack.c.bf16 %v964_v7, %v963_v6  ;;  %v2086_v10 = vpop.f32.mrb[44].mxu0 }
 0x1cf   : > { %v853_v11 = vadd.f32 %v2086_v10, %v2883_v45  ;;  %v844_v12 = vpop.f32.mrb[45].mxu0 }
 0x1d0   : > { %v845_v13 = vadd.f32 %v2883_v45, %v844_v12  ;;  %v2087_v14 = vpop.f32.mrb[46].mxu0  ;;  %2160 = vmatprep.mubr.bf16.mxu1 %v1007_v9 }
 0x1d1   : > { %v856_v15 = vadd.f32 %v2087_v14, %v2883_v45  ;;  %v847_v16 = vpop.f32.mrb[47].mxu0  ;;  %2161 = vmatmul.mubr.bf16.gmra.mrb[36].mxu1 %v1008_v8  ;;  %v969_v18 = vmax.f32 %v853_v11, 0.0 }
 0x1d2   : > { %v848_v17 = vadd.f32 %v2883_v45, %v847_v16  ;;  %v967_v20 = vmax.f32 %v845_v13, 0.0 }
 0x1d3   : > { %v970_v19 = vmax.f32 %v856_v15, 0.0 }
 0x1d4   : > { %v968_v21 = vmax.f32 %v848_v17, 0.0  ;;  %v2949_v17 = vld [vmem:[#allocation10] ss:$0 sm:$0xff] }
 0x1d5   : > { %v1010_v22 = vpack.c.bf16 %v970_v19, %v969_v18 }
 0x1d6   : > { %v1009_v23 = vpack.c.bf16 %v968_v21, %v967_v20  ;;  %v2090_v24 = vpop.f32.mrb[48].mxu0 }
 0x1d7   : > { %v869_v25 = vadd.f32 %v2090_v24, %v2883_v45  ;;  %v860_v26 = vpop.f32.mrb[49].mxu0 }
 0x1d8   : > { %v861_v27 = vadd.f32 %v2883_v45, %v860_v26  ;;  %v2091_v28 = vpop.f32.mrb[50].mxu0  ;;  %2164 = vmatprep.mubr.bf16.mxu1 %v1009_v23 }
 0x1d9   : > { %v872_v29 = vadd.f32 %v2091_v28, %v2883_v45  ;;  %v863_v30 = vpop.f32.mrb[51].mxu0  ;;  %2165 = vmatmul.mubr.bf16.gmra.mrb[40].mxu1 %v1010_v22  ;;  %v973_v32 = vmax.f32 %v869_v25, 0.0 }
 0x1da   : > { %v864_v31 = vadd.f32 %v2883_v45, %v863_v30  ;;  %v971_v34 = vmax.f32 %v861_v27, 0.0 }
 0x1db   : > { %v974_v33 = vmax.f32 %v872_v29, 0.0 }
 0x1dc   : > { %v972_v35 = vmax.f32 %v864_v31, 0.0 }
 0x1dd   : > { %v1012_v36 = vpack.c.bf16 %v974_v33, %v973_v32 }
 0x1de   : > { %v1011_v37 = vpack.c.bf16 %v972_v35, %v971_v34  ;;  %v2094_v38 = vpop.f32.mrb[52].mxu0 }
 0x1df   : > { %v885_v39 = vadd.f32 %v2094_v38, %v2883_v45  ;;  %v876_v40 = vpop.f32.mrb[53].mxu0 }
 0x1e0   : > { %v877_v41 = vadd.f32 %v2883_v45, %v876_v40  ;;  %v2095_v42 = vpop.f32.mrb[54].mxu0  ;;  %2168 = vmatprep.mubr.bf16.mxu1 %v1011_v37 }
 0x1e1   : > { %v888_v43 = vadd.f32 %v2095_v42, %v2883_v45  ;;  %v879_v44 = vpop.f32.mrb[55].mxu0  ;;  %2169 = vmatmul.mubr.bf16.gmra.mrb[44].mxu1 %v1012_v36  ;;  %v977_v47 = vmax.f32 %v885_v39, 0.0 }
 0x1e2   : > { %v880_v46 = vadd.f32 %v2883_v45, %v879_v44  ;;  %v975_v49 = vmax.f32 %v877_v41, 0.0 }
 0x1e3   : > { %v978_v48 = vmax.f32 %v888_v43, 0.0 }
 0x1e4   : > { %v976_v50 = vmax.f32 %v880_v46, 0.0 }
 0x1e5   : > { %v1014_v51 = vpack.c.bf16 %v978_v48, %v977_v47 }
 0x1e6   : > { %v1013_v52 = vpack.c.bf16 %v976_v50, %v975_v49  ;;  %v2098_v53 = vpop.f32.mrb[56].mxu0 }
 0x1e7   : > { %v901_v54 = vadd.f32 %v2098_v53, %v2883_v45  ;;  %v892_v55 = vpop.f32.mrb[57].mxu0 }
 0x1e8   : > { %v893_v56 = vadd.f32 %v2883_v45, %v892_v55  ;;  %v2099_v57 = vpop.f32.mrb[58].mxu0  ;;  %2172 = vmatprep.mubr.bf16.mxu1 %v1013_v52 }
 0x1e9   : > { %v904_v58 = vadd.f32 %v2099_v57, %v2883_v45  ;;  %v895_v59 = vpop.f32.mrb[59].mxu0  ;;  %2173 = vmatmul.mubr.bf16.gmra.mrb[48].mxu1 %v1014_v51  ;;  %v981_v61 = vmax.f32 %v901_v54, 0.0 }
 0x1ea   : > { %v896_v60 = vadd.f32 %v2883_v45, %v895_v59  ;;  %v979_v63 = vmax.f32 %v893_v56, 0.0 }
 0x1eb   : > { %v982_v62 = vmax.f32 %v904_v58, 0.0 }
 0x1ec   : > { %v980_v0 = vmax.f32 %v896_v60, 0.0 }
 0x1ed   : > { %v1016_v1 = vpack.c.bf16 %v982_v62, %v981_v61 }
 0x1ee   : > { %v1015_v2 = vpack.c.bf16 %v980_v0, %v979_v63  ;;  %v2102_v3 = vpop.f32.mrb[60].mxu0 }
 0x1ef   : > { %v917_v4 = vadd.f32 %v2102_v3, %v2883_v45  ;;  %v908_v5 = vpop.f32.mrb[61].mxu0 }
 0x1f0   : > { %v909_v6 = vadd.f32 %v2883_v45, %v908_v5  ;;  %v2103_v7 = vpop.f32.mrb[62].mxu0  ;;  %2176 = vmatprep.mubr.bf16.mxu1 %v1015_v2 }
 0x1f1   : > { %v920_v8 = vadd.f32 %v2103_v7, %v2883_v45  ;;  %v911_v9 = vpop.f32.mrb[63].mxu0  ;;  %2177 = vmatmul.mubr.bf16.gmra.mrb[52].mxu1 %v1016_v1  ;;  %v985_v11 = vmax.f32 %v917_v4, 0.0 }
 0x1f2   : > { %v912_v10 = vadd.f32 %v2883_v45, %v911_v9  ;;  %v983_v13 = vmax.f32 %v909_v6, 0.0 }
 0x1f3   : > { %v986_v12 = vmax.f32 %v920_v8, 0.0 }
 0x1f4   : > { %v984_v14 = vmax.f32 %v912_v10, 0.0 }
 0x1f5   : > { %v1018_v15 = vpack.c.bf16 %v986_v12, %v985_v11 }
 0x1f6   : > { %v1017_v16 = vpack.c.bf16 %v984_v14, %v983_v13 }
 0x1f8   : > { %2180 = vmatprep.mubr.bf16.mxu1 %v1017_v16 }
 0x1f9   : > { %2181 = vmatmul.mubr.bf16.gmra.mrb[56].mxu1 %v1018_v15 }
 0x254   : > { %v2122_v18 = vpop.f32.mrb[64].mxu0 }
 0x255   : > { %v1133_v19 = vadd.f32 %v2122_v18, %v2949_v17  ;;  %v1124_v20 = vpop.f32.mrb[65].mxu0 }
 0x256   : > { %v1125_v21 = vadd.f32 %v2949_v17, %v1124_v20  ;;  %v2123_v22 = vpop.f32.mrb[66].mxu0 }
 0x257   : > { %v1136_v23 = vadd.f32 %v2123_v22, %v2949_v17  ;;  %v1127_v45 = vpop.f32.mrb[67].mxu0  ;;  %v1381_v25 = vmax.f32 %v1133_v19, 0.0 }
 0x258   : > { %v1128_v24 = vadd.f32 %v2949_v17, %v1127_v45  ;;  %v1379_v27 = vmax.f32 %v1125_v21, 0.0 }
 0x259   : > { %v1382_v26 = vmax.f32 %v1136_v23, 0.0 }
 0x25a   : > { %v1380_v28 = vmax.f32 %v1128_v24, 0.0 }
 0x25b   : > { %v1450_v29 = vmax.f32 %v1381_v25, %v1382_v26 }
 0x25c   : > { %v1443_v30 = vmax.f32 %v1379_v27, %v1380_v28  ;;  %v2126_v31 = vpop.f32.mrb[0].mxu1 }
 0x25d   : > { %v1451_v32 = vrot.slane %v1450_v29, 4  ;;  %v1149_v33 = vadd.f32 %v2126_v31, %v2949_v17  ;;  %v1140_v34 = vpop.f32.mrb[1].mxu1 }
 0x25e   : > { %v1444_v35 = vrot.slane %v1443_v30, 4  ;;  %v1141_v36 = vadd.f32 %v2949_v17, %v1140_v34  ;;  %v2127_v37 = vpop.f32.mrb[2].mxu1 }
 0x25f   : > { %v1452_v38 = vmax.f32 %v1450_v29, %v1451_v32  ;;  %v1152_v39 = vadd.f32 %v2127_v37, %v2949_v17  ;;  %v1143_v40 = vpop.f32.mrb[3].mxu1  ;;  %v1385_v44 = vmax.f32 %v1149_v33, 0.0 }
 0x260   : > { %v1445_v41 = vmax.f32 %v1443_v30, %v1444_v35  ;;  %v1144_v42 = vadd.f32 %v2949_v17, %v1143_v40  ;;  %v1383_v48 = vmax.f32 %v1141_v36, 0.0 }
 0x261   : > { %v1453_v43 = vrot.slane %v1452_v38, 2  ;;  %v1386_v46 = vmax.f32 %v1152_v39, 0.0 }
 0x262   : > { %v1446_v47 = vrot.slane %v1445_v41, 2  ;;  %v1384_v49 = vmax.f32 %v1144_v42, 0.0 }
 0x263   : > { %v1454_v50 = vmax.f32 %v1452_v38, %v1453_v43  ;;  %v1464_v51 = vmax.f32 %v1385_v44, %v1386_v46 }
 0x264   : > { %v1447_v52 = vmax.f32 %v1445_v41, %v1446_v47  ;;  %v1457_v53 = vmax.f32 %v1383_v48, %v1384_v49  ;;  %v2130_v54 = vpop.f32.mrb[4].mxu1 }
 0x265   : > { %v1455_v55 = vrot.slane %v1454_v50, 1  ;;  %v1465_v56 = vrot.slane %v1464_v51, 4  ;;  %v1165_v57 = vadd.f32 %v2130_v54, %v2949_v17  ;;  %v1156_v58 = vpop.f32.mrb[5].mxu1 }
 0x266   : > { %v1448_v59 = vrot.slane %v1447_v52, 1  ;;  %v1458_v60 = vrot.slane %v1457_v53, 4  ;;  %v1157_v61 = vadd.f32 %v2949_v17, %v1156_v58  ;;  %v2131_v62 = vpop.f32.mrb[6].mxu1 }
 0x267   : > { %v1456_v63 = vmax.f32 %v1454_v50, %v1455_v55  ;;  %v1466_v0 = vmax.f32 %v1464_v51, %v1465_v56  ;;  %v1168_v1 = vadd.f32 %v2131_v62, %v2949_v17  ;;  %v1159_v2 = vpop.f32.mrb[7].mxu1  ;;  %v1389_v7 = vmax.f32 %v1165_v57, 0.0 }
 0x268   : > { %v1449_v3 = vmax.f32 %v1447_v52, %v1448_v59  ;;  %v1459_v4 = vmax.f32 %v1457_v53, %v1458_v60  ;;  %v1160_v5 = vadd.f32 %v2949_v17, %v1159_v2  ;;  %v1387_v11 = vmax.f32 %v1157_v61, 0.0 }
 0x269   : > { %v1467_v6 = vrot.slane %v1466_v0, 2  ;;  %v1390_v8 = vmax.f32 %v1168_v1, 0.0 }
 0x26a   : > { %v1700_v9 = vsel %vm1699_vm3, %v1456_v63, %v1449_v3  ;;  %v1460_v10 = vrot.slane %v1459_v4, 2  ;;  %v1388_v12 = vmax.f32 %v1160_v5, 0.0 }
 0x26b   : > { %v1468_v13 = vmax.f32 %v1466_v0, %v1467_v6  ;;  %v1478_v14 = vmax.f32 %v1389_v7, %v1390_v8 }
 0x26c   : > { %v1461_v15 = vmax.f32 %v1459_v4, %v1460_v10  ;;  %v1471_v16 = vmax.f32 %v1387_v11, %v1388_v12  ;;  %v2134_v18 = vpop.f32.mrb[8].mxu1 }
 0x26d   : > { %v1469_v19 = vrot.slane %v1468_v13, 1  ;;  %v1479_v20 = vrot.slane %v1478_v14, 4  ;;  %v1181_v21 = vadd.f32 %v2134_v18, %v2949_v17  ;;  %v1172_v22 = vpop.f32.mrb[9].mxu1 }
 0x26e   : > { %v1462_v23 = vrot.slane %v1461_v15, 1  ;;  %v1472_v45 = vrot.slane %v1471_v16, 4  ;;  %v1173_v24 = vadd.f32 %v2949_v17, %v1172_v22  ;;  %v2135_v25 = vpop.f32.mrb[10].mxu1 }
 0x26f   : > { %v1480_v26 = vmax.f32 %v1478_v14, %v1479_v20  ;;  %v1184_v27 = vadd.f32 %v2135_v25, %v2949_v17  ;;  %v1175_v28 = vpop.f32.mrb[11].mxu1  ;;  %v1470_v32 = vmax.f32 %v1468_v13, %v1469_v19  ;;  %v1393_v34 = vmax.f32 %v1181_v21, 0.0 }
 0x270   : > { %v1463_v29 = vmax.f32 %v1461_v15, %v1462_v23  ;;  %v1473_v30 = vmax.f32 %v1471_v16, %v1472_v45  ;;  %v1176_v31 = vadd.f32 %v2949_v17, %v1175_v28  ;;  %v1391_v38 = vmax.f32 %v1173_v24, 0.0 }
 0x271   : > { %v1481_v33 = vrot.slane %v1480_v26, 2  ;;  %v1394_v35 = vmax.f32 %v1184_v27, 0.0 }
 0x272   : > { %v1702_v36 = vsel %vm1701_vm4, %v1463_v29, %v1700_v9  ;;  %v1474_v37 = vrot.slane %v1473_v30, 2  ;;  %v1392_v39 = vmax.f32 %v1176_v31, 0.0 }
 0x273   : > { %v1482_v40 = vmax.f32 %v1480_v26, %v1481_v33  ;;  %v1704_v41 = vsel %vm1703_vm5, %v1470_v32, %v1702_v36  ;;  %v1492_v42 = vmax.f32 %v1393_v34, %v1394_v35 }
 0x274   : > { %v1475_v43 = vmax.f32 %v1473_v30, %v1474_v37  ;;  %v1485_v44 = vmax.f32 %v1391_v38, %v1392_v39  ;;  %v2138_v46 = vpop.f32.mrb[12].mxu1 }
 0x275   : > { %v1483_v47 = vrot.slane %v1482_v40, 1  ;;  %v1493_v48 = vrot.slane %v1492_v42, 4  ;;  %v1197_v49 = vadd.f32 %v2138_v46, %v2949_v17  ;;  %v1188_v50 = vpop.f32.mrb[13].mxu1 }
 0x276   : > { %v1476_v51 = vrot.slane %v1475_v43, 1  ;;  %v1486_v52 = vrot.slane %v1485_v44, 4  ;;  %v1189_v53 = vadd.f32 %v2949_v17, %v1188_v50  ;;  %v2139_v54 = vpop.f32.mrb[14].mxu1 }
 0x277   : > { %v1494_v55 = vmax.f32 %v1492_v42, %v1493_v48  ;;  %v1200_v56 = vadd.f32 %v2139_v54, %v2949_v17  ;;  %v1191_v57 = vpop.f32.mrb[15].mxu1  ;;  %v1484_v61 = vmax.f32 %v1482_v40, %v1483_v47  ;;  %v1397_v63 = vmax.f32 %v1197_v49, 0.0 }
 0x278   : > { %v1477_v58 = vmax.f32 %v1475_v43, %v1476_v51  ;;  %v1487_v59 = vmax.f32 %v1485_v44, %v1486_v52  ;;  %v1192_v60 = vadd.f32 %v2949_v17, %v1191_v57  ;;  %v1395_v3 = vmax.f32 %v1189_v53, 0.0 }
 0x279   : > { %v1495_v62 = vrot.slane %v1494_v55, 2  ;;  %v1398_v0 = vmax.f32 %v1200_v56, 0.0 }
 0x27a   : > { %v1706_v1 = vsel %vm1705_vm6, %v1477_v58, %v1704_v41  ;;  %v1488_v2 = vrot.slane %v1487_v59, 2  ;;  %v1396_v4 = vmax.f32 %v1192_v60, 0.0 }
 0x27b   : > { %v1496_v5 = vmax.f32 %v1494_v55, %v1495_v62  ;;  %v1708_v6 = vsel %vm1707_vm7, %v1484_v61, %v1706_v1  ;;  %v1506_v7 = vmax.f32 %v1397_v63, %v1398_v0 }
 0x27c   : > { %v1489_v8 = vmax.f32 %v1487_v59, %v1488_v2  ;;  %v1499_v9 = vmax.f32 %v1395_v3, %v1396_v4  ;;  %v2142_v10 = vpop.f32.mrb[16].mxu1 }
 0x27d   : > { %v1497_v11 = vrot.slane %v1496_v5, 1  ;;  %v1507_v12 = vrot.slane %v1506_v7, 4  ;;  %v1213_v13 = vadd.f32 %v2142_v10, %v2949_v17  ;;  %v1204_v14 = vpop.f32.mrb[17].mxu1 }
 0x27e   : > { %v1490_v15 = vrot.slane %v1489_v8, 1  ;;  %v1500_v16 = vrot.slane %v1499_v9, 4  ;;  %v1205_v18 = vadd.f32 %v2949_v17, %v1204_v14  ;;  %v2143_v19 = vpop.f32.mrb[18].mxu1 }
 0x27f   : > { %v1508_v20 = vmax.f32 %v1506_v7, %v1507_v12  ;;  %v1216_v21 = vadd.f32 %v2143_v19, %v2949_v17  ;;  %v1207_v22 = vpop.f32.mrb[19].mxu1  ;;  %v1498_v25 = vmax.f32 %v1496_v5, %v1497_v11  ;;  %v1401_v27 = vmax.f32 %v1213_v13, 0.0 }
 0x280   : > { %v1491_v23 = vmax.f32 %v1489_v8, %v1490_v15  ;;  %v1501_v45 = vmax.f32 %v1499_v9, %v1500_v16  ;;  %v1208_v24 = vadd.f32 %v2949_v17, %v1207_v22  ;;  %v1399_v31 = vmax.f32 %v1205_v18, 0.0 }
 0x281   : > { %v1509_v26 = vrot.slane %v1508_v20, 2  ;;  %v1402_v28 = vmax.f32 %v1216_v21, 0.0 }
 0x282   : > { %v1710_v29 = vsel %vm1709_vm8, %v1491_v23, %v1708_v6  ;;  %v1502_v30 = vrot.slane %v1501_v45, 2  ;;  %v1400_v32 = vmax.f32 %v1208_v24, 0.0 }
 0x283   : > { %v1712_v33 = vsel %vm1711_vm9, %v1498_v25, %v1710_v29  ;;  %v1510_v34 = vmax.f32 %v1508_v20, %v1509_v26  ;;  %v1520_v35 = vmax.f32 %v1401_v27, %v1402_v28 }
 0x284   : > { %1738 = vst [vmem:[%s2983_s26] sm:$0xff] %v1712_v33  ;;  %v1503_v36 = vmax.f32 %v1501_v45, %v1502_v30  ;;  %v1513_v37 = vmax.f32 %v1399_v31, %v1400_v32  ;;  %v2146_v38 = vpop.f32.mrb[20].mxu1 }
 0x285   : > { %v1511_v39 = vrot.slane %v1510_v34, 1  ;;  %v1521_v40 = vrot.slane %v1520_v35, 4  ;;  %v1229_v41 = vadd.f32 %v2146_v38, %v2949_v17  ;;  %v1220_v42 = vpop.f32.mrb[21].mxu1 }
 0x286   : > { %v1504_v43 = vrot.slane %v1503_v36, 1  ;;  %v1514_v44 = vrot.slane %v1513_v37, 4  ;;  %v1221_v46 = vadd.f32 %v2949_v17, %v1220_v42  ;;  %v2147_v47 = vpop.f32.mrb[22].mxu1 }
 0x287   : > { %v1512_v48 = vmax.f32 %v1510_v34, %v1511_v39  ;;  %v1522_v49 = vmax.f32 %v1520_v35, %v1521_v40  ;;  %v1232_v50 = vadd.f32 %v2147_v47, %v2949_v17  ;;  %v1223_v51 = vpop.f32.mrb[23].mxu1  ;;  %v1405_v56 = vmax.f32 %v1229_v41, 0.0 }
 0x288   : > { %v1505_v52 = vmax.f32 %v1503_v36, %v1504_v43  ;;  %v1515_v53 = vmax.f32 %v1513_v37, %v1514_v44  ;;  %v1224_v54 = vadd.f32 %v2949_v17, %v1223_v51  ;;  %v1403_v60 = vmax.f32 %v1221_v46, 0.0 }
 0x289   : > { %v1523_v55 = vrot.slane %v1522_v49, 2  ;;  %v1406_v57 = vmax.f32 %v1232_v50, 0.0 }
 0x28a   : > { %v1713_v58 = vsel %vm1699_vm3, %v1512_v48, %v1505_v52  ;;  %v1516_v59 = vrot.slane %v1515_v53, 2  ;;  %v1404_v61 = vmax.f32 %v1224_v54, 0.0 }
 0x28b   : > { %v1524_v62 = vmax.f32 %v1522_v49, %v1523_v55  ;;  %v1534_v63 = vmax.f32 %v1405_v56, %v1406_v57 }
 0x28c   : > { %v1517_v0 = vmax.f32 %v1515_v53, %v1516_v59  ;;  %v1527_v1 = vmax.f32 %v1403_v60, %v1404_v61  ;;  %v2150_v2 = vpop.f32.mrb[24].mxu1 }
 0x28d   : > { %v1525_v3 = vrot.slane %v1524_v62, 1  ;;  %v1535_v4 = vrot.slane %v1534_v63, 4  ;;  %v1245_v5 = vadd.f32 %v2150_v2, %v2949_v17  ;;  %v1236_v6 = vpop.f32.mrb[25].mxu1 }
 0x28e   : > { %v1518_v7 = vrot.slane %v1517_v0, 1  ;;  %v1528_v8 = vrot.slane %v1527_v1, 4  ;;  %v1237_v9 = vadd.f32 %v2949_v17, %v1236_v6  ;;  %v2151_v10 = vpop.f32.mrb[26].mxu1 }
 0x28f   : > { %v1536_v11 = vmax.f32 %v1534_v63, %v1535_v4  ;;  %v1248_v12 = vadd.f32 %v2151_v10, %v2949_v17  ;;  %v1239_v13 = vpop.f32.mrb[27].mxu1  ;;  %v1526_v18 = vmax.f32 %v1524_v62, %v1525_v3  ;;  %v1409_v20 = vmax.f32 %v1245_v5, 0.0 }
 0x290   : > { %v1519_v14 = vmax.f32 %v1517_v0, %v1518_v7  ;;  %v1529_v15 = vmax.f32 %v1527_v1, %v1528_v8  ;;  %v1240_v16 = vadd.f32 %v2949_v17, %v1239_v13  ;;  %v1407_v45 = vmax.f32 %v1237_v9, 0.0 }
 0x291   : > { %v1537_v19 = vrot.slane %v1536_v11, 2  ;;  %v1410_v21 = vmax.f32 %v1248_v12, 0.0 }
 0x292   : > { %v1714_v22 = vsel %vm1701_vm4, %v1519_v14, %v1713_v58  ;;  %v1530_v23 = vrot.slane %v1529_v15, 2  ;;  %v1408_v24 = vmax.f32 %v1240_v16, 0.0 }
 0x293   : > { %v1538_v25 = vmax.f32 %v1536_v11, %v1537_v19  ;;  %v1715_v26 = vsel %vm1703_vm5, %v1526_v18, %v1714_v22  ;;  %v1548_v27 = vmax.f32 %v1409_v20, %v1410_v21 }
 0x294   : > { %v1531_v28 = vmax.f32 %v1529_v15, %v1530_v23  ;;  %v1541_v29 = vmax.f32 %v1407_v45, %v1408_v24  ;;  %v2154_v30 = vpop.f32.mrb[28].mxu1 }
 0x295   : > { %v1539_v31 = vrot.slane %v1538_v25, 1  ;;  %v1549_v32 = vrot.slane %v1548_v27, 4  ;;  %v1261_v33 = vadd.f32 %v2154_v30, %v2949_v17  ;;  %v1252_v34 = vpop.f32.mrb[29].mxu1 }
 0x296   : > { %v1532_v35 = vrot.slane %v1531_v28, 1  ;;  %v1542_v36 = vrot.slane %v1541_v29, 4  ;;  %v1253_v37 = vadd.f32 %v2949_v17, %v1252_v34  ;;  %v2155_v38 = vpop.f32.mrb[30].mxu1 }
 0x297   : > { %v1550_v39 = vmax.f32 %v1548_v27, %v1549_v32  ;;  %v1264_v40 = vadd.f32 %v2155_v38, %v2949_v17  ;;  %v1255_v41 = vpop.f32.mrb[31].mxu1  ;;  %v1540_v46 = vmax.f32 %v1538_v25, %v1539_v31  ;;  %v1413_v48 = vmax.f32 %v1261_v33, 0.0 }
 0x298   : > { %v1533_v42 = vmax.f32 %v1531_v28, %v1532_v35  ;;  %v1543_v43 = vmax.f32 %v1541_v29, %v1542_v36  ;;  %v1256_v44 = vadd.f32 %v2949_v17, %v1255_v41  ;;  %v1411_v52 = vmax.f32 %v1253_v37, 0.0 }
 0x299   : > { %v1551_v47 = vrot.slane %v1550_v39, 2  ;;  %v1414_v49 = vmax.f32 %v1264_v40, 0.0 }
 0x29a   : > { %v1716_v50 = vsel %vm1705_vm6, %v1533_v42, %v1715_v26  ;;  %v1544_v51 = vrot.slane %v1543_v43, 2  ;;  %v1412_v53 = vmax.f32 %v1256_v44, 0.0 }
 0x29b   : > { %v1552_v54 = vmax.f32 %v1550_v39, %v1551_v47  ;;  %v1717_v55 = vsel %vm1707_vm7, %v1540_v46, %v1716_v50  ;;  %v1562_v56 = vmax.f32 %v1413_v48, %v1414_v49 }
 0x29c   : > { %v1545_v57 = vmax.f32 %v1543_v43, %v1544_v51  ;;  %v1555_v58 = vmax.f32 %v1411_v52, %v1412_v53  ;;  %v2158_v59 = vpop.f32.mrb[32].mxu1 }
 0x29d   : > { %v1553_v60 = vrot.slane %v1552_v54, 1  ;;  %v1563_v61 = vrot.slane %v1562_v56, 4  ;;  %v1277_v62 = vadd.f32 %v2158_v59, %v2949_v17  ;;  %v1268_v63 = vpop.f32.mrb[33].mxu1 }
 0x29e   : > { %v1546_v0 = vrot.slane %v1545_v57, 1  ;;  %v1556_v1 = vrot.slane %v1555_v58, 4  ;;  %v1269_v2 = vadd.f32 %v2949_v17, %v1268_v63  ;;  %v2159_v3 = vpop.f32.mrb[34].mxu1 }
 0x29f   : > { %v1564_v4 = vmax.f32 %v1562_v56, %v1563_v61  ;;  %v1280_v5 = vadd.f32 %v2159_v3, %v2949_v17  ;;  %v1271_v6 = vpop.f32.mrb[35].mxu1  ;;  %v1554_v10 = vmax.f32 %v1552_v54, %v1553_v60  ;;  %v1417_v12 = vmax.f32 %v1277_v62, 0.0 }
 0x2a0   : > { %v1547_v7 = vmax.f32 %v1545_v57, %v1546_v0  ;;  %v1557_v8 = vmax.f32 %v1555_v58, %v1556_v1  ;;  %v1272_v9 = vadd.f32 %v2949_v17, %v1271_v6  ;;  %v1415_v16 = vmax.f32 %v1269_v2, 0.0 }
 0x2a1   : > { %v1565_v11 = vrot.slane %v1564_v4, 2  ;;  %v1418_v13 = vmax.f32 %v1280_v5, 0.0 }
 0x2a2   : > { %v1718_v14 = vsel %vm1709_vm8, %v1547_v7, %v1717_v55  ;;  %v1558_v15 = vrot.slane %v1557_v8, 2  ;;  %v1416_v18 = vmax.f32 %v1272_v9, 0.0 }
 0x2a3   : > { %v1719_v19 = vsel %vm1711_vm9, %v1554_v10, %v1718_v14  ;;  %v1566_v20 = vmax.f32 %v1564_v4, %v1565_v11  ;;  %v1576_v21 = vmax.f32 %v1417_v12, %v1418_v13 }
 0x2a4   : > { %1739 = vst [vmem:[%s2983_s26 + $0x8] sm:$0xff] %v1719_v19  ;;  %v1559_v22 = vmax.f32 %v1557_v8, %v1558_v15  ;;  %v1569_v23 = vmax.f32 %v1415_v16, %v1416_v18  ;;  %v2162_v45 = vpop.f32.mrb[36].mxu1 }
 0x2a5   : > { %v1567_v24 = vrot.slane %v1566_v20, 1  ;;  %v1577_v25 = vrot.slane %v1576_v21, 4  ;;  %v1293_v26 = vadd.f32 %v2162_v45, %v2949_v17  ;;  %v1284_v27 = vpop.f32.mrb[37].mxu1 }
 0x2a6   : > { %v1560_v28 = vrot.slane %v1559_v22, 1  ;;  %v1570_v29 = vrot.slane %v1569_v23, 4  ;;  %v1285_v30 = vadd.f32 %v2949_v17, %v1284_v27  ;;  %v2163_v31 = vpop.f32.mrb[38].mxu1 }
 0x2a7   : > { %v1568_v32 = vmax.f32 %v1566_v20, %v1567_v24  ;;  %v1578_v33 = vmax.f32 %v1576_v21, %v1577_v25  ;;  %v1296_v34 = vadd.f32 %v2163_v31, %v2949_v17  ;;  %v1287_v35 = vpop.f32.mrb[39].mxu1  ;;  %v1421_v40 = vmax.f32 %v1293_v26, 0.0 }
 0x2a8   : > { %v1561_v36 = vmax.f32 %v1559_v22, %v1560_v28  ;;  %v1571_v37 = vmax.f32 %v1569_v23, %v1570_v29  ;;  %v1288_v38 = vadd.f32 %v2949_v17, %v1287_v35  ;;  %v1419_v44 = vmax.f32 %v1285_v30, 0.0 }
 0x2a9   : > { %v1579_v39 = vrot.slane %v1578_v33, 2  ;;  %v1422_v41 = vmax.f32 %v1296_v34, 0.0 }
 0x2aa   : > { %v1720_v42 = vsel %vm1699_vm3, %v1568_v32, %v1561_v36  ;;  %v1572_v43 = vrot.slane %v1571_v37, 2  ;;  %v1420_v46 = vmax.f32 %v1288_v38, 0.0 }
 0x2ab   : > { %v1580_v47 = vmax.f32 %v1578_v33, %v1579_v39  ;;  %v1590_v48 = vmax.f32 %v1421_v40, %v1422_v41 }
 0x2ac   : > { %v1573_v49 = vmax.f32 %v1571_v37, %v1572_v43  ;;  %v1583_v50 = vmax.f32 %v1419_v44, %v1420_v46  ;;  %v2166_v51 = vpop.f32.mrb[40].mxu1 }
 0x2ad   : > { %v1581_v52 = vrot.slane %v1580_v47, 1  ;;  %v1591_v53 = vrot.slane %v1590_v48, 4  ;;  %v1309_v54 = vadd.f32 %v2166_v51, %v2949_v17  ;;  %v1300_v55 = vpop.f32.mrb[41].mxu1 }
 0x2ae   : > { %v1574_v56 = vrot.slane %v1573_v49, 1  ;;  %v1584_v57 = vrot.slane %v1583_v50, 4  ;;  %v1301_v58 = vadd.f32 %v2949_v17, %v1300_v55  ;;  %v2167_v59 = vpop.f32.mrb[42].mxu1 }
 0x2af   : > { %v1592_v60 = vmax.f32 %v1590_v48, %v1591_v53  ;;  %v1312_v61 = vadd.f32 %v2167_v59, %v2949_v17  ;;  %v1303_v62 = vpop.f32.mrb[43].mxu1  ;;  %v1582_v2 = vmax.f32 %v1580_v47, %v1581_v52  ;;  %v1425_v4 = vmax.f32 %v1309_v54, 0.0 }
 0x2b0   : > { %v1575_v63 = vmax.f32 %v1573_v49, %v1574_v56  ;;  %v1585_v0 = vmax.f32 %v1583_v50, %v1584_v57  ;;  %v1304_v1 = vadd.f32 %v2949_v17, %v1303_v62  ;;  %v1423_v8 = vmax.f32 %v1301_v58, 0.0 }
 0x2b1   : > { %v1593_v3 = vrot.slane %v1592_v60, 2  ;;  %v1426_v5 = vmax.f32 %v1312_v61, 0.0 }
 0x2b2   : > { %v1721_v6 = vsel %vm1701_vm4, %v1575_v63, %v1720_v42  ;;  %v1586_v7 = vrot.slane %v1585_v0, 2  ;;  %v1424_v9 = vmax.f32 %v1304_v1, 0.0 }
 0x2b3   : > { %v1594_v10 = vmax.f32 %v1592_v60, %v1593_v3  ;;  %v1722_v11 = vsel %vm1703_vm5, %v1582_v2, %v1721_v6  ;;  %v1604_v12 = vmax.f32 %v1425_v4, %v1426_v5 }
 0x2b4   : > { %v1587_v13 = vmax.f32 %v1585_v0, %v1586_v7  ;;  %v1597_v14 = vmax.f32 %v1423_v8, %v1424_v9  ;;  %v2170_v15 = vpop.f32.mrb[44].mxu1 }
 0x2b5   : > { %v1595_v16 = vrot.slane %v1594_v10, 1  ;;  %v1605_v18 = vrot.slane %v1604_v12, 4  ;;  %v1325_v19 = vadd.f32 %v2170_v15, %v2949_v17  ;;  %v1316_v20 = vpop.f32.mrb[45].mxu1 }
 0x2b6   : > { %v1588_v21 = vrot.slane %v1587_v13, 1  ;;  %v1598_v22 = vrot.slane %v1597_v14, 4  ;;  %v1317_v23 = vadd.f32 %v2949_v17, %v1316_v20  ;;  %v2171_v45 = vpop.f32.mrb[46].mxu1 }
 0x2b7   : > { %v1606_v24 = vmax.f32 %v1604_v12, %v1605_v18  ;;  %v1328_v25 = vadd.f32 %v2171_v45, %v2949_v17  ;;  %v1319_v26 = vpop.f32.mrb[47].mxu1  ;;  %v1596_v30 = vmax.f32 %v1594_v10, %v1595_v16  ;;  %v1429_v32 = vmax.f32 %v1325_v19, 0.0 }
 0x2b8   : > { %v1589_v27 = vmax.f32 %v1587_v13, %v1588_v21  ;;  %v1599_v28 = vmax.f32 %v1597_v14, %v1598_v22  ;;  %v1320_v29 = vadd.f32 %v2949_v17, %v1319_v26  ;;  %v1427_v36 = vmax.f32 %v1317_v23, 0.0 }
 0x2b9   : > { %v1607_v31 = vrot.slane %v1606_v24, 2  ;;  %v1430_v33 = vmax.f32 %v1328_v25, 0.0 }
 0x2ba   : > { %v1723_v34 = vsel %vm1705_vm6, %v1589_v27, %v1722_v11  ;;  %v1600_v35 = vrot.slane %v1599_v28, 2  ;;  %v1428_v37 = vmax.f32 %v1320_v29, 0.0 }
 0x2bb   : > { %v1608_v38 = vmax.f32 %v1606_v24, %v1607_v31  ;;  %v1724_v39 = vsel %vm1707_vm7, %v1596_v30, %v1723_v34  ;;  %v1618_v40 = vmax.f32 %v1429_v32, %v1430_v33 }
 0x2bc   : > { %v1601_v41 = vmax.f32 %v1599_v28, %v1600_v35  ;;  %v1611_v42 = vmax.f32 %v1427_v36, %v1428_v37  ;;  %v2174_v43 = vpop.f32.mrb[48].mxu1 }
 0x2bd   : > { %v1609_v44 = vrot.slane %v1608_v38, 1  ;;  %v1619_v46 = vrot.slane %v1618_v40, 4  ;;  %v1341_v47 = vadd.f32 %v2174_v43, %v2949_v17  ;;  %v1332_v48 = vpop.f32.mrb[49].mxu1 }
 0x2be   : > { %v1602_v49 = vrot.slane %v1601_v41, 1  ;;  %v1612_v50 = vrot.slane %v1611_v42, 4  ;;  %v1333_v51 = vadd.f32 %v2949_v17, %v1332_v48  ;;  %v2175_v52 = vpop.f32.mrb[50].mxu1 }
 0x2bf   : > { %v1620_v53 = vmax.f32 %v1618_v40, %v1619_v46  ;;  %v1344_v54 = vadd.f32 %v2175_v52, %v2949_v17  ;;  %v1335_v55 = vpop.f32.mrb[51].mxu1  ;;  %v1610_v59 = vmax.f32 %v1608_v38, %v1609_v44  ;;  %v1433_v61 = vmax.f32 %v1341_v47, 0.0 }
 0x2c0   : > { %v1603_v56 = vmax.f32 %v1601_v41, %v1602_v49  ;;  %v1613_v57 = vmax.f32 %v1611_v42, %v1612_v50  ;;  %v1336_v58 = vadd.f32 %v2949_v17, %v1335_v55  ;;  %v1431_v1 = vmax.f32 %v1333_v51, 0.0 }
 0x2c1   : > { %v1621_v60 = vrot.slane %v1620_v53, 2  ;;  %v1434_v62 = vmax.f32 %v1344_v54, 0.0 }
 0x2c2   : > { %v1725_v63 = vsel %vm1709_vm8, %v1603_v56, %v1724_v39  ;;  %v1614_v0 = vrot.slane %v1613_v57, 2  ;;  %v1432_v2 = vmax.f32 %v1336_v58, 0.0 }
 0x2c3   : > { %v1726_v3 = vsel %vm1711_vm9, %v1610_v59, %v1725_v63  ;;  %v1622_v4 = vmax.f32 %v1620_v53, %v1621_v60  ;;  %v1632_v5 = vmax.f32 %v1433_v61, %v1434_v62 }
 0x2c4   : > { %1740 = vst [vmem:[%s2983_s26 + $0x10] sm:$0xff] %v1726_v3  ;;  %v1615_v6 = vmax.f32 %v1613_v57, %v1614_v0  ;;  %v1625_v7 = vmax.f32 %v1431_v1, %v1432_v2  ;;  %v2178_v8 = vpop.f32.mrb[52].mxu1 }
 0x2c5   : > { %v1623_v9 = vrot.slane %v1622_v4, 1  ;;  %v1633_v10 = vrot.slane %v1632_v5, 4  ;;  %v1357_v11 = vadd.f32 %v2178_v8, %v2949_v17  ;;  %v1348_v12 = vpop.f32.mrb[53].mxu1 }
 0x2c6   : > { %v1616_v13 = vrot.slane %v1615_v6, 1  ;;  %v1626_v14 = vrot.slane %v1625_v7, 4  ;;  %v1349_v15 = vadd.f32 %v2949_v17, %v1348_v12  ;;  %v2179_v16 = vpop.f32.mrb[54].mxu1 }
 0x2c7   : > { %v1624_v18 = vmax.f32 %v1622_v4, %v1623_v9  ;;  %v1634_v19 = vmax.f32 %v1632_v5, %v1633_v10  ;;  %v1360_v20 = vadd.f32 %v2179_v16, %v2949_v17  ;;  %v1351_v21 = vpop.f32.mrb[55].mxu1  ;;  %v1437_v25 = vmax.f32 %v1357_v11, 0.0 }
 0x2c8   : > { %v1617_v22 = vmax.f32 %v1615_v6, %v1616_v13  ;;  %v1627_v23 = vmax.f32 %v1625_v7, %v1626_v14  ;;  %v1352_v45 = vadd.f32 %v2949_v17, %v1351_v21  ;;  %v1435_v29 = vmax.f32 %v1349_v15, 0.0 }
 0x2c9   : > { %v1635_v24 = vrot.slane %v1634_v19, 2  ;;  %v1438_v26 = vmax.f32 %v1360_v20, 0.0 }
 0x2ca   : > { %v1727_v27 = vsel %vm1699_vm3, %v1624_v18, %v1617_v22  ;;  %v1628_v28 = vrot.slane %v1627_v23, 2  ;;  %v1436_v30 = vmax.f32 %v1352_v45, 0.0 }
 0x2cb   : > { %v1636_v31 = vmax.f32 %v1634_v19, %v1635_v24  ;;  %v1646_v32 = vmax.f32 %v1437_v25, %v1438_v26 }
 0x2cc   : > { %v1629_v33 = vmax.f32 %v1627_v23, %v1628_v28  ;;  %v1639_v34 = vmax.f32 %v1435_v29, %v1436_v30  ;;  %v2182_v35 = vpop.f32.mrb[56].mxu1 }
 0x2cd   : > { %v1637_v36 = vrot.slane %v1636_v31, 1  ;;  %v1647_v37 = vrot.slane %v1646_v32, 4  ;;  %v1373_v38 = vadd.f32 %v2182_v35, %v2949_v17  ;;  %v1364_v39 = vpop.f32.mrb[57].mxu1 }
 0x2ce   : > { %v1630_v40 = vrot.slane %v1629_v33, 1  ;;  %v1640_v41 = vrot.slane %v1639_v34, 4  ;;  %v1365_v42 = vadd.f32 %v2949_v17, %v1364_v39  ;;  %v2183_v43 = vpop.f32.mrb[58].mxu1 }
 0x2cf   : > { %v1648_v44 = vmax.f32 %v1646_v32, %v1647_v37  ;;  %v1376_v46 = vadd.f32 %v2183_v43, %v2949_v17  ;;  %v1367_v47 = vpop.f32.mrb[59].mxu1  ;;  %v1638_v51 = vmax.f32 %v1636_v31, %v1637_v36  ;;  %v1441_v53 = vmax.f32 %v1373_v38, 0.0 }
 0x2d0   : > { %v1631_v48 = vmax.f32 %v1629_v33, %v1630_v40  ;;  %v1641_v49 = vmax.f32 %v1639_v34, %v1640_v41  ;;  %v1368_v50 = vadd.f32 %v2949_v17, %v1367_v47  ;;  %v1439_v57 = vmax.f32 %v1365_v42, 0.0 }
 0x2d1   : > { %v1649_v52 = vrot.slane %v1648_v44, 2  ;;  %v1442_v54 = vmax.f32 %v1376_v46, 0.0 }
 0x2d2   : > { %v1728_v55 = vsel %vm1701_vm4, %v1631_v48, %v1727_v27  ;;  %v1642_v56 = vrot.slane %v1641_v49, 2  ;;  %v1440_v58 = vmax.f32 %v1368_v50, 0.0 }
 0x2d3   : > { %v1650_v59 = vmax.f32 %v1648_v44, %v1649_v52  ;;  %v1729_v60 = vsel %vm1703_vm5, %v1638_v51, %v1728_v55  ;;  %v1660_v61 = vmax.f32 %v1441_v53, %v1442_v54 }
 0x2d4   : > { %v1643_v62 = vmax.f32 %v1641_v49, %v1642_v56  ;;  %v1653_v63 = vmax.f32 %v1439_v57, %v1440_v58 }
 0x2d5   : > { %v1651_v0 = vrot.slane %v1650_v59, 1  ;;  %v1661_v1 = vrot.slane %v1660_v61, 4 }
 0x2d6   : > { %v1644_v17 = vrot.slane %v1643_v62, 1  ;;  %v1654_v2 = vrot.slane %v1653_v63, 4 }
 0x2d7   : > { %v1662_v3 = vmax.f32 %v1660_v61, %v1661_v1  ;;  %v1652_v6 = vmax.f32 %v1650_v59, %v1651_v0 }
 0x2d8   : > { %v1645_v4 = vmax.f32 %v1643_v62, %v1644_v17  ;;  %v1655_v5 = vmax.f32 %v1653_v63, %v1654_v2 }
 0x2d9   : > { %v1663_v7 = vrot.slane %v1662_v3, 2 }
 0x2da   : > { %v1730_v8 = vsel %vm1705_vm6, %v1645_v4, %v1729_v60  ;;  %v1656_v9 = vrot.slane %v1655_v5, 2 }
 0x2db   : > { %v1664_v10 = vmax.f32 %v1662_v3, %v1663_v7  ;;  %v1731_v11 = vsel %vm1707_vm7, %v1652_v6, %v1730_v8 }
 0x2dc   : > { %v1657_v12 = vmax.f32 %v1655_v5, %v1656_v9 }
 0x2dd   : > { %v1665_v13 = vrot.slane %v1664_v10, 1 }
 0x2de   : > { %v1658_v14 = vrot.slane %v1657_v12, 1 }
 0x2df   : > { %v1666_v16 = vmax.f32 %v1664_v10, %v1665_v13 }
 0x2e0   : > { %v1659_v15 = vmax.f32 %v1657_v12, %v1658_v14 }
 0x2e2   : > { %v1732_v18 = vsel %vm1709_vm8, %v1659_v15, %v1731_v11 }
 0x2e3   : > { %v1733_v19 = vsel %vm1711_vm9, %v1666_v16, %v1732_v18 }
 0x2e4   : > { %1741 = vst [vmem:[%s2983_s26 + $0x18] sm:$0xff] %v1733_v19 }
 0x2e5   : > { %2487 = shalt.err (!%p2484_p13)
}
 0x2e6   : > { %s2488_s10 = scalar_lea.hbm %s3052_s28, 512  ;;  %s2492_s12 = scalar_lea.hbm %s3106_s5, 1024 }
 0x2e7   : > { %p2489_p0 = scmp.ne.s32.totalorder %s3052_s28, %s2488_s10  ;;  %p2493_p9 = scmp.lt.u32.totalorder %s3052_s28, %s3106_s5 }
 0x2e8   : > { %p2494_p12 = scmp.lt.u32.totalorder %s2492_s12, %s2488_s10  ;;  %p2496_p4 = scmp.lt.u32.totalorder %s2488_s10, %s3052_s28 }
 0x2e9   : > { %p2490_p5 = pnand %p2489_p0, %p2746_p1 }
 0x2ea   : > { %p2495_p2 = por %p2494_p12, %p2493_p9 }
 0x2eb   : > { %p2491_p11 = pneg %p2490_p5 }
 0x2ec   : > { %p2497_p6 = por %p2496_p4, %p2495_p2 }
 0x2ee   : > { %p2498_p8 = pnand %p2497_p6, %p2491_p11 }
 0x2f0   : > { %2501 = shalt.err (!%p2498_p8)
}
 0x2f1   : > { %s2559_s15 = smov 128   ;;  %s2560_s13 = smov 8  }
 0x2f2   : > { %2218 = dma.vmem_to_hbm [thread:$0]  (%p2746_p1), %s3054_s16, 512, %s3052_s28, %s1743_s17, %s2559_s15, %s2559_s15, %s2560_s13  }
 0x2f3 PF: > { %s1771_s30 = sand.u32 1, %s2536_s18   ;;  %p3124_p3 = scmp.ne.s32.totalorder %s3111_s25, 0 }
 0x2f4   : > { %p3125_p7 = scmp.ge.s32.totalorder %s2548_s21, 2  ;;  %s1772_s22 = scalar_lea.sflag [#allocation4], %s1771_s30 }
 0x2f6   : > { %p2238_p10 = pnand %p3125_p7, %p3124_p3 }
 0x2f8   : > { %2531 = dma.done.wait (!%p2238_p10), %s1772_s22, 512  }
 0x2f9   : > { %2533 = vsyncadd (!%p2238_p10), %s1772_s22, 4294966784  ;;  %p20_p13 = scmp.ge.s32.totalorder %s2736_s14, 4   ;;  %s3126_s18 = smov %s2540_s19 }
 0x2fa   : > { %s3127_s19 = smov %s2544_s20  ;;  %s3128_s20 = smov %s2752_s7 }
 0x2fb   : > { %s3129_s21 = smov %s2736_s14  ;;  %22 = sbr.rel (!%p20_p13) target bundleno = 7 (0x7), region = 101 }
 0x302   :  { %1777 = vsyncpa [#allocation3], 1 }
 0x303   :  { %1779 = vsyncpa [#allocation3 + $0x1], 1 }
 0x304   :  { %1780 = vsyncpa [#allocation6], 1 }
 0x305   :  { %1781 = vsyncpa [#allocation9], 1 }
 0x306   :  { %1782 = vsyncpa [#allocation4], 1 }
 0x307   :  { %1784 = vsyncpa [#allocation4 + $0x1], 1 }

</bundles_post_ra>
